<compile_context>
chip_gen: v7x
topology: tpu7x:2x2x1
jax: 0.10.0
libtpu: 0.0.40
codegen_flags: <defaults>
</compile_context>

<pallas_src>
import functools
import math

import numpy as np
import jax
import jax.numpy as jnp
from jax.experimental import pallas as pl
from jax.experimental.pallas import tpu as pltpu

NUM_SUBSET = 3
BN_EPS = 1e-5


def _gcn_kernel(x_ref, Ab_ref, W_ref, b_ref, out_ref, *, num_subset):
    """One (n_block samples) x (t_block frames) tile per grid step.

    x_ref  : (n_block*C, L)                     input rows (sample-major), L = t_block*V
    Ab_ref : (L, num_subset*L)                  [kron(I_tb, A*attn_0) | ... | subset 2]
    W_ref  : (num_subset+1, n_block*O, n_block*C)  sample-block-diag BN-folded weights,
                                                   index num_subset = residual path
    b_ref  : (n_block*O, 1)                     fused bias + BN shifts (f32)
    out_ref: (n_block*O, L)                     lane-dense output rows
    """
    x = x_ref[...]                                                   # (nbC, L)
    L = x.shape[-1]

    # Graph mixing for ALL subsets in one MXU matmul: (nbC, L) @ (L, 3L).
    mix = jnp.dot(x, Ab_ref[...], preferred_element_type=jnp.float32)
    mix = mix.astype(x.dtype)                                        # (nbC, 3L)

    # Channel contraction (1x1 convs + residual conv + BN scales), f32-accumulated.
    # Lane-aligned L-wide slices of `mix` are free views; no concat, no reshape.
    acc = jnp.dot(W_ref[num_subset], x, preferred_element_type=jnp.float32)
    for j in range(num_subset):
        acc = acc + jnp.dot(W_ref[j], mix[:, j * L:(j + 1) * L],
                            preferred_element_type=jnp.float32)

    out_ref[...] = (acc + b_ref[...]).astype(out_ref.dtype)         # f32 epilogue


def _pick_n_block(N, C):
    """Samples per grid step: aim for ~256 rows (fills MXU M on v6e/v7x), keep
    >= 2 grid steps when possible (v7x has 2 TensorCores), keep n_block*C % 8 == 0."""
    nb = min(N, max(1, 256 // max(C, 1)))
    if N >= 2:
        nb = min(nb, (N + 1) // 2)
    while nb > 1 and (nb * C) % 8 != 0:
        nb -= 1
    return max(nb, 1)


def _pick_t_block(T, V, max_lanes=512):
    """Frames per grid step: bound the materialized kron(I_tb, A) (3*(tb*V)^2 elems)
    while staying lane-dense (tb*V % 128 == 0).  Falls back to the whole T."""
    for tbc in range(T, 0, -1):
        if T % tbc:
            continue
        lanes = tbc * V
        if lanes % 128 == 0 and lanes <= max_lanes:
            return tbc
    return T


def graph_convolution(x, A, graph_attn, conv_w, conv_b,
                      bn_gamma, bn_beta, bn_mean, bn_var,
                      res_w=None, res_b=None,
                      rbn_gamma=None, rbn_beta=None, rbn_mean=None, rbn_var=None,
                      compute_dtype=jnp.float32, n_block=None):
    """x: (N, C, T, V) -> (N, O, T, V).  res_w=None => identity residual (C == O)."""
    N, C, T, V = x.shape
    O = conv_w.shape[1]
    out_dtype = x.dtype

    # ---- fold eval-mode BatchNorm into per-channel scale/shift, then into weights ----
    bn_s = bn_gamma / jnp.sqrt(bn_var + BN_EPS)                      # (O,)
    bn_b = bn_beta - bn_mean * bn_s                                  # (O,)
    w_fold = bn_s[None, :, None] * conv_w                            # (3, O, C)
    b_total = bn_s * jnp.sum(conv_b, axis=0) + bn_b                  # (O,)

    if res_w is None:
        # PyTorch: in_channels == out_channels -> identity residual (no conv, no BN).
        wr_fold = jnp.eye(O, C, dtype=jnp.float32)
    else:
        rbn_s = rbn_gamma / jnp.sqrt(rbn_var + BN_EPS)
        rbn_b = rbn_beta - rbn_mean * rbn_s
        wr_fold = rbn_s[:, None] * res_w                             # (O, C)
        b_total = b_total + rbn_s * res_b + rbn_b

    # ---- tiling ----
    nb = n_block if n_block is not None else _pick_n_block(N, C)
    tb = _pick_t_block(T, V)
    L = tb * V
    n_steps = pl.cdiv(N, nb)
    N_pad = n_steps * nb
    nbC, nbO = nb * C, nb * O
    grid = (n_steps, T // tb)

    # ---- operands, all hoisted out of the kernel ----
    # Graph operator: kron(I_tb, A*attn_i), concatenated along lanes -> ONE MXU matmul.
    A_eff = (A * graph_attn).astype(jnp.float32)                     # (3, V, V)
    eye_tb = jnp.eye(tb, dtype=jnp.float32)
    A_blk = jnp.einsum('ts,kuv->ktusv', eye_tb, A_eff).reshape(NUM_SUBSET, L, L)
    Ab_cat = jnp.concatenate([A_blk[i] for i in range(NUM_SUBSET)], axis=1)   # (L, 3L)

    # Sample-block-diagonal fused weights: W_stack[j] = kron(I_nb, W_j); [3] = residual.
    eye_nb = jnp.eye(nb, dtype=jnp.float32)
    W_stack = jnp.stack(
        [jnp.kron(eye_nb, w_fold[i]) for i in range(NUM_SUBSET)]
        + [jnp.kron(eye_nb, wr_fold)], axis=0)                        # (4, nbO, nbC)
    b_big = jnp.tile(b_total, nb).reshape(nbO, 1).astype(jnp.float32)

    # Lane-dense 2-D views (leading-dim merge -> no data movement); pad N if needed.
    x2d = x.reshape(N * C, T * V)
    if N_pad != N:
        x2d = jnp.pad(x2d, ((0, (N_pad - N) * C), (0, 0)))

    x2d = x2d.astype(compute_dtype)            # bf16 on v5e/v6e/v7x for MXU operands
    Ab_cat = Ab_cat.astype(compute_dtype)
    W_stack = W_stack.astype(compute_dtype)

    kernel = functools.partial(_gcn_kernel, num_subset=NUM_SUBSET)

    # Advisory cost estimate so XLA schedules around the custom call correctly.
    c_item = jnp.dtype(compute_dtype).itemsize
    o_item = jnp.dtype(out_dtype).itemsize
    flops = int(grid[0] * grid[1]
                * (2 * nbC * L * (NUM_SUBSET * L)                     # graph mix
                   + 2 * (NUM_SUBSET + 1) * nbO * nbC * L))           # channel + residual
    bytes_accessed = int(x2d.size * c_item + N_pad * O * T * V * o_item
                         + Ab_cat.size * c_item + W_stack.size * c_item + b_big.size * 4)

    blk_bytes = (nbC * L * c_item) + (nbO * L * max(c_item, o_item))
    const_bytes = (Ab_cat.size + W_stack.size) * c_item + b_big.size * 4
    vmem_limit = int(min(max(4 * blk_bytes + 2 * const_bytes + (4 << 20), 16 << 20),
                         48 << 20))

    def build_call(single_buffer_consts):
        def const_spec(shape):
            kwargs = {}
            if single_buffer_consts:
                kwargs["pipeline_mode"] = pl.Buffered(1)    # grid-invariant: 1 buffer
            idx = (lambda n, t: (0, 0)) if len(shape) == 2 else (lambda n, t: (0, 0, 0))
            return pl.BlockSpec(shape, idx, **kwargs)

        return pl.pallas_call(
            kernel,
            out_shape=jax.ShapeDtypeStruct((N_pad * O, T * V), out_dtype),
            grid=grid,
            in_specs=[
                pl.BlockSpec((nbC, L), lambda n, t: (n, t)),    # x rows (per step)
                const_spec((L, NUM_SUBSET * L)),                # concatenated graph ops
                const_spec((NUM_SUBSET + 1, nbO, nbC)),         # fused block-diag weights
                const_spec((nbO, 1)),                           # fused bias / BN shifts
            ],
            out_specs=pl.BlockSpec((nbO, L), lambda n, t: (n, t)),
            compiler_params=pltpu.CompilerParams(
                dimension_semantics=("parallel", "parallel"),
                vmem_limit_bytes=vmem_limit),
            cost_estimate=pl.CostEstimate(
                flops=flops, transcendentals=0, bytes_accessed=bytes_accessed),
        )

    try:
        out2d = build_call(True)(x2d, Ab_cat, W_stack, b_big)
    except Exception:
        # pl.Buffered(1) (single-buffered constants) not supported on this jax/libtpu:
        # fall back to default double-buffered constant specs (small VMEM cost).
        out2d = build_call(False)(x2d, Ab_cat, W_stack, b_big)

    if N_pad != N:
        out2d = out2d[:N * O]
    return out2d.reshape(N, O, T, V)


def reference(x, A, graph_attn, conv_w, conv_b,
              bn_gamma, bn_beta, bn_mean, bn_var,
              res_w=None, res_b=None,
              rbn_gamma=None, rbn_beta=None, rbn_mean=None, rbn_var=None):
    """Pure-JAX mirror of GraphConvolution.forward (eval-mode BN)."""
    N, C, T, V = x.shape
    Ae = A * graph_attn
    hidden = None
    for i in range(NUM_SUBSET):
        xa = x.reshape(N, C * T, V)
        y = jnp.matmul(xa, Ae[i]).reshape(N, C, T, V)
        z = jnp.einsum('oc,nctv->notv', conv_w[i], y) + conv_b[i][None, :, None, None]
        hidden = z if hidden is None else hidden + z

    def bn(h, g, b, m, v):
        s = g / jnp.sqrt(v + BN_EPS)
        return (h - m[None, :, None, None]) * s[None, :, None, None] + b[None, :, None, None]

    hidden = bn(hidden, bn_gamma, bn_beta, bn_mean, bn_var)
    if res_w is None:
        res = x
    else:
        res = jnp.einsum('oc,nctv->notv', res_w, x) + res_b[None, :, None, None]
        res = bn(res, rbn_gamma, rbn_beta, rbn_mean, rbn_var)
    return hidden + res


if __name__ == "__main__":
    key = jax.random.PRNGKey(0)
    ks = jax.random.split(key, 12)

    # ------ Test 1: in_channels != out_channels (residual conv + BN), batch-blocked ---
    N, C, O, T, V = 16, 4, 8, 8, 16          # T*V = 128 lanes; n_block=8 -> grid=(2,1)

    x = jax.random.normal(ks[0], (N, C, T, V), jnp.float32)
    A = jax.random.uniform(ks[1], (NUM_SUBSET, V, V), jnp.float32)

    graph_attn = jnp.ones((NUM_SUBSET, V, V), jnp.float32)            # constant_(1)
    conv_std = math.sqrt(2.0 / (O * C * 1 * NUM_SUBSET))              # weights_init bs=3
    conv_w = conv_std * jax.random.normal(ks[2], (NUM_SUBSET, O, C), jnp.float32)
    conv_b = jnp.zeros((NUM_SUBSET, O), jnp.float32)

    bn_gamma = jnp.full((O,), 1e-6, jnp.float32)                      # weights_init(bn, 1e-6)
    bn_beta = jnp.zeros((O,), jnp.float32)
    bn_mean = jnp.zeros((O,), jnp.float32)
    bn_var = jnp.ones((O,), jnp.float32)

    res_std = math.sqrt(2.0 / O)                                      # kaiming fan_out, 1x1
    res_w = res_std * jax.random.normal(ks[3], (O, C), jnp.float32)
    res_b = jnp.zeros((O,), jnp.float32)
    rbn_gamma = jnp.ones((O,), jnp.float32)
    rbn_beta = jnp.zeros((O,), jnp.float32)
    rbn_mean = jnp.zeros((O,), jnp.float32)
    rbn_var = jnp.ones((O,), jnp.float32)

    args1 = (x, A, graph_attn, conv_w, conv_b,
             bn_gamma, bn_beta, bn_mean, bn_var,
             res_w, res_b, rbn_gamma, rbn_beta, rbn_mean, rbn_var)

    out1 = jax.block_until_ready(graph_convolution(*args1))
    assert out1.shape == (N, O, T, V)
    np.testing.assert_allclose(np.asarray(out1), np.asarray(reference(*args1)),
                               rtol=1e-4, atol=1e-5)

    # ------ Test 2: in_channels == out_channels (identity residual) --------------------
    C2 = O2 = 8
    x2 = jax.random.normal(ks[4], (N, C2, T, V), jnp.float32)
    conv_w2 = 0.3 * jax.random.normal(ks[5], (NUM_SUBSET, O2, C2), jnp.float32)
    conv_b2 = 0.1 * jax.random.normal(ks[6], (NUM_SUBSET, O2), jnp.float32)
    bn_gamma2 = 0.5 + jax.random.uniform(ks[7], (O2,), jnp.float32)
    bn_beta2 = 0.1 * jax.random.normal(ks[8], (O2,), jnp.float32)
    bn_mean2 = 0.1 * jax.random.normal(ks[9], (O2,), jnp.float32)
    bn_var2 = 0.5 + jax.random.uniform(ks[10], (O2,), jnp.float32)

    args2 = (x2, A, graph_attn, conv_w2, conv_b2,
             bn_gamma2, bn_beta2, bn_mean2, bn_var2)

    out2 = jax.block_until_ready(graph_convolution(*args2))
    assert out2.shape == (N, O2, T, V)
    np.testing.assert_allclose(np.asarray(out2), np.asarray(reference(*args2)),
                               rtol=1e-4, atol=1e-5)

    # ------ Test 3: N not divisible by n_block (padding path) --------------------------
    args3 = (x[:3],) + args1[1:]
    out3 = jax.block_until_ready(graph_convolution(*args3))
    assert out3.shape == (3, O, T, V)
    np.testing.assert_allclose(np.asarray(out3), np.asarray(reference(*args3)),
                               rtol=1e-4, atol=1e-5)

    # ------ Test 4: bf16 MXU operands (v5e/v6e/v7x fast path), loose tolerance ----------
    out4 = jax.block_until_ready(graph_convolution(*args2, compute_dtype=jnp.bfloat16))
    np.testing.assert_allclose(np.asarray(out4), np.asarray(reference(*args2)),
                               rtol=2e-2, atol=1.5e-1)

    print("KERNEL_OK")
</pallas_src>

<mosaic_0001>
module attributes {stable_mosaic.version = 11 : i64} {
  func.func @_gcn_kernel(%arg0: i32, %arg1: i32, %arg2: memref<32x128xf32, #tpu.memory_space<vmem>>, %arg3: memref<128x384xf32, #tpu.memory_space<vmem>>, %arg4: memref<4x64x32xf32, #tpu.memory_space<vmem>>, %arg5: memref<64x1xf32, #tpu.memory_space<vmem>>, %arg6: memref<64x128xf32, #tpu.memory_space<vmem>>) attributes {dimension_semantics = [#tpu.dimension_semantics<parallel>, #tpu.dimension_semantics<parallel>], iteration_bounds = array<i64: 2, 1>, scalar_prefetch = 0 : i64, scratch_operands = 0 : i64, tpu.core_type = #tpu.core_type<tc>, window_params = [{transform_indices = @transform_0, window_bounds = array<i64: 32, 128>}, {pipeline_mode = #tpu.pipeline_mode<synchronous>, transform_indices = @transform_1, window_bounds = array<i64: 128, 384>}, {pipeline_mode = #tpu.pipeline_mode<synchronous>, transform_indices = @transform_2, window_bounds = array<i64: 4, 64, 32>}, {pipeline_mode = #tpu.pipeline_mode<synchronous>, transform_indices = @transform_3, window_bounds = array<i64: 64, 1>}, {transform_indices = @transform_4, window_bounds = array<i64: 64, 128>}]} {
    %c0 = arith.constant 0 : index
    %c0_0 = arith.constant 0 : index
    %0 = vector.load %arg2[%c0, %c0_0] : memref<32x128xf32, #tpu.memory_space<vmem>>, vector<32x128xf32>
    %c0_1 = arith.constant 0 : index
    %c0_2 = arith.constant 0 : index
    %1 = vector.load %arg3[%c0_1, %c0_2] : memref<128x384xf32, #tpu.memory_space<vmem>>, vector<128x384xf32>
    %cst = arith.constant dense<0.000000e+00> : vector<32x384xf32>
    %2 = tpu.matmul %0, %1, %cst {dimension_numbers = #tpu.dot_dimension_numbers<[1], [0], [0], [1], [0, 0, 1, 1], [], []>} : vector<32x128xf32>, vector<128x384xf32>, vector<32x384xf32> -> vector<32x384xf32>
    %c3 = arith.constant 3 : index
    %c0_3 = arith.constant 0 : index
    %c0_4 = arith.constant 0 : index
    %3 = vector.load %arg4[%c3, %c0_3, %c0_4] : memref<4x64x32xf32, #tpu.memory_space<vmem>>, vector<1x64x32xf32>
    %4 = vector.shape_cast %3 : vector<1x64x32xf32> to vector<64x32xf32>
    %cst_5 = arith.constant dense<0.000000e+00> : vector<64x128xf32>
    %5 = tpu.matmul %4, %0, %cst_5 {dimension_numbers = #tpu.dot_dimension_numbers<[1], [0], [0], [1], [0, 0, 1, 1], [], []>} : vector<64x32xf32>, vector<32x128xf32>, vector<64x128xf32> -> vector<64x128xf32>
    %c0_6 = arith.constant 0 : index
    %c0_7 = arith.constant 0 : index
    %c0_8 = arith.constant 0 : index
    %6 = vector.load %arg4[%c0_6, %c0_7, %c0_8] : memref<4x64x32xf32, #tpu.memory_space<vmem>>, vector<1x64x32xf32>
    %7 = vector.shape_cast %6 : vector<1x64x32xf32> to vector<64x32xf32>
    %8 = vector.extract_strided_slice %2 {offsets = [0, 0], sizes = [32, 128], strides = [1, 1]} : vector<32x384xf32> to vector<32x128xf32>
    %cst_9 = arith.constant dense<0.000000e+00> : vector<64x128xf32>
    %9 = tpu.matmul %7, %8, %cst_9 {dimension_numbers = #tpu.dot_dimension_numbers<[1], [0], [0], [1], [0, 0, 1, 1], [], []>} : vector<64x32xf32>, vector<32x128xf32>, vector<64x128xf32> -> vector<64x128xf32>
    %10 = arith.addf %5, %9 : vector<64x128xf32>
    %c1 = arith.constant 1 : index
    %c0_10 = arith.constant 0 : index
    %c0_11 = arith.constant 0 : index
    %11 = vector.load %arg4[%c1, %c0_10, %c0_11] : memref<4x64x32xf32, #tpu.memory_space<vmem>>, vector<1x64x32xf32>
    %12 = vector.shape_cast %11 : vector<1x64x32xf32> to vector<64x32xf32>
    %13 = vector.extract_strided_slice %2 {offsets = [0, 128], sizes = [32, 128], strides = [1, 1]} : vector<32x384xf32> to vector<32x128xf32>
    %cst_12 = arith.constant dense<0.000000e+00> : vector<64x128xf32>
    %14 = tpu.matmul %12, %13, %cst_12 {dimension_numbers = #tpu.dot_dimension_numbers<[1], [0], [0], [1], [0, 0, 1, 1], [], []>} : vector<64x32xf32>, vector<32x128xf32>, vector<64x128xf32> -> vector<64x128xf32>
    %15 = arith.addf %10, %14 : vector<64x128xf32>
    %c2 = arith.constant 2 : index
    %c0_13 = arith.constant 0 : index
    %c0_14 = arith.constant 0 : index
    %16 = vector.load %arg4[%c2, %c0_13, %c0_14] : memref<4x64x32xf32, #tpu.memory_space<vmem>>, vector<1x64x32xf32>
    %17 = vector.shape_cast %16 : vector<1x64x32xf32> to vector<64x32xf32>
    %18 = vector.extract_strided_slice %2 {offsets = [0, 256], sizes = [32, 128], strides = [1, 1]} : vector<32x384xf32> to vector<32x128xf32>
    %cst_15 = arith.constant dense<0.000000e+00> : vector<64x128xf32>
    %19 = tpu.matmul %17, %18, %cst_15 {dimension_numbers = #tpu.dot_dimension_numbers<[1], [0], [0], [1], [0, 0, 1, 1], [], []>} : vector<64x32xf32>, vector<32x128xf32>, vector<64x128xf32> -> vector<64x128xf32>
    %20 = arith.addf %15, %19 : vector<64x128xf32>
    %c0_16 = arith.constant 0 : index
    %c0_17 = arith.constant 0 : index
    %21 = vector.load %arg5[%c0_16, %c0_17] : memref<64x1xf32, #tpu.memory_space<vmem>>, vector<64x1xf32>
    %22 = vector.broadcast %21 : vector<64x1xf32> to vector<64x128xf32>
    %23 = arith.addf %20, %22 : vector<64x128xf32>
    %c0_18 = arith.constant 0 : index
    %c0_19 = arith.constant 0 : index
    %24 = vector.load %arg6[%c0_18, %c0_19] : memref<64x128xf32, #tpu.memory_space<vmem>>, vector<64x128xf32>
    tpu.vector_store %arg6[%c0_18, %c0_19], %23 {strides = array<i32>} : memref<64x128xf32, #tpu.memory_space<vmem>>, vector<64x128xf32>,
    return
  }
  func.func @transform_0(%arg0: i32, %arg1: i32) -> (i32, i32) {
    %c0_i32 = arith.constant 0 : i32
    return %arg0, %arg1 : i32, i32
  }
  func.func @transform_1(%arg0: i32, %arg1: i32) -> (i32, i32) {
    %c0_i32 = arith.constant 0 : i32
    %c0_i32_0 = arith.constant 0 : i32
    %c0_i32_1 = arith.constant 0 : i32
    return %c0_i32, %c0_i32_0 : i32, i32
  }
  func.func @transform_2(%arg0: i32, %arg1: i32) -> (i32, i32, i32) {
    %c0_i32 = arith.constant 0 : i32
    %c0_i32_0 = arith.constant 0 : i32
    %c0_i32_1 = arith.constant 0 : i32
    %c0_i32_2 = arith.constant 0 : i32
    return %c0_i32, %c0_i32_0, %c0_i32_1 : i32, i32, i32
  }
  func.func @transform_3(%arg0: i32, %arg1: i32) -> (i32, i32) {
    %c0_i32 = arith.constant 0 : i32
    %c0_i32_0 = arith.constant 0 : i32
    %c0_i32_1 = arith.constant 0 : i32
    return %c0_i32, %c0_i32_0 : i32, i32
  }
  func.func @transform_4(%arg0: i32, %arg1: i32) -> (i32, i32) {
    %c0_i32 = arith.constant 0 : i32
    return %arg0, %arg1 : i32, i32
  }
}

module attributes {stable_mosaic.version = 11 : i64} {
  func.func @_gcn_kernel(%arg0: i32, %arg1: i32, %arg2: memref<32x128xf32, #tpu.memory_space<vmem>>, %arg3: memref<128x384xf32, #tpu.memory_space<vmem>>, %arg4: memref<4x64x32xf32, #tpu.memory_space<vmem>>, %arg5: memref<64x1xf32, #tpu.memory_space<vmem>>, %arg6: memref<64x128xf32, #tpu.memory_space<vmem>>) attributes {dimension_semantics = [#tpu.dimension_semantics<parallel>, #tpu.dimension_semantics<parallel>], iteration_bounds = array<i64: 2, 1>, scalar_prefetch = 0 : i64, scratch_operands = 0 : i64, tpu.core_type = #tpu.core_type<tc>, window_params = [{transform_indices = @transform_0, window_bounds = array<i64: 32, 128>}, {pipeline_mode = #tpu.pipeline_mode<synchronous>, transform_indices = @transform_1, window_bounds = array<i64: 128, 384>}, {pipeline_mode = #tpu.pipeline_mode<synchronous>, transform_indices = @transform_2, window_bounds = array<i64: 4, 64, 32>}, {pipeline_mode = #tpu.pipeline_mode<synchronous>, transform_indices = @transform_3, window_bounds = array<i64: 64, 1>}, {transform_indices = @transform_4, window_bounds = array<i64: 64, 128>}]} {
    %c0 = arith.constant 0 : index
    %c0_0 = arith.constant 0 : index
    %0 = vector.load %arg2[%c0, %c0_0] : memref<32x128xf32, #tpu.memory_space<vmem>>, vector<32x128xf32>
    %c0_1 = arith.constant 0 : index
    %c0_2 = arith.constant 0 : index
    %1 = vector.load %arg3[%c0_1, %c0_2] : memref<128x384xf32, #tpu.memory_space<vmem>>, vector<128x384xf32>
    %cst = arith.constant dense<0.000000e+00> : vector<32x384xf32>
    %2 = tpu.matmul %0, %1, %cst {dimension_numbers = #tpu.dot_dimension_numbers<[1], [0], [0], [1], [0, 0, 1, 1], [], []>} : vector<32x128xf32>, vector<128x384xf32>, vector<32x384xf32> -> vector<32x384xf32>
    %c3 = arith.constant 3 : index
    %c0_3 = arith.constant 0 : index
    %c0_4 = arith.constant 0 : index
    %3 = vector.load %arg4[%c3, %c0_3, %c0_4] : memref<4x64x32xf32, #tpu.memory_space<vmem>>, vector<1x64x32xf32>
    %4 = vector.shape_cast %3 : vector<1x64x32xf32> to vector<64x32xf32>
    %cst_5 = arith.constant dense<0.000000e+00> : vector<64x128xf32>
    %5 = tpu.matmul %4, %0, %cst_5 {dimension_numbers = #tpu.dot_dimension_numbers<[1], [0], [0], [1], [0, 0, 1, 1], [], []>} : vector<64x32xf32>, vector<32x128xf32>, vector<64x128xf32> -> vector<64x128xf32>
    %c0_6 = arith.constant 0 : index
    %c0_7 = arith.constant 0 : index
    %c0_8 = arith.constant 0 : index
    %6 = vector.load %arg4[%c0_6, %c0_7, %c0_8] : memref<4x64x32xf32, #tpu.memory_space<vmem>>, vector<1x64x32xf32>
    %7 = vector.shape_cast %6 : vector<1x64x32xf32> to vector<64x32xf32>
    %8 = vector.extract_strided_slice %2 {offsets = [0, 0], sizes = [32, 128], strides = [1, 1]} : vector<32x384xf32> to vector<32x128xf32>
    %cst_9 = arith.constant dense<0.000000e+00> : vector<64x128xf32>
    %9 = tpu.matmul %7, %8, %cst_9 {dimension_numbers = #tpu.dot_dimension_numbers<[1], [0], [0], [1], [0, 0, 1, 1], [], []>} : vector<64x32xf32>, vector<32x128xf32>, vector<64x128xf32> -> vector<64x128xf32>
    %10 = arith.addf %5, %9 : vector<64x128xf32>
    %c1 = arith.constant 1 : index
    %c0_10 = arith.constant 0 : index
    %c0_11 = arith.constant 0 : index
    %11 = vector.load %arg4[%c1, %c0_10, %c0_11] : memref<4x64x32xf32, #tpu.memory_space<vmem>>, vector<1x64x32xf32>
    %12 = vector.shape_cast %11 : vector<1x64x32xf32> to vector<64x32xf32>
    %13 = vector.extract_strided_slice %2 {offsets = [0, 128], sizes = [32, 128], strides = [1, 1]} : vector<32x384xf32> to vector<32x128xf32>
    %cst_12 = arith.constant dense<0.000000e+00> : vector<64x128xf32>
    %14 = tpu.matmul %12, %13, %cst_12 {dimension_numbers = #tpu.dot_dimension_numbers<[1], [0], [0], [1], [0, 0, 1, 1], [], []>} : vector<64x32xf32>, vector<32x128xf32>, vector<64x128xf32> -> vector<64x128xf32>
    %15 = arith.addf %10, %14 : vector<64x128xf32>
    %c2 = arith.constant 2 : index
    %c0_13 = arith.constant 0 : index
    %c0_14 = arith.constant 0 : index
    %16 = vector.load %arg4[%c2, %c0_13, %c0_14] : memref<4x64x32xf32, #tpu.memory_space<vmem>>, vector<1x64x32xf32>
    %17 = vector.shape_cast %16 : vector<1x64x32xf32> to vector<64x32xf32>
    %18 = vector.extract_strided_slice %2 {offsets = [0, 256], sizes = [32, 128], strides = [1, 1]} : vector<32x384xf32> to vector<32x128xf32>
    %cst_15 = arith.constant dense<0.000000e+00> : vector<64x128xf32>
    %19 = tpu.matmul %17, %18, %cst_15 {dimension_numbers = #tpu.dot_dimension_numbers<[1], [0], [0], [1], [0, 0, 1, 1], [], []>} : vector<64x32xf32>, vector<32x128xf32>, vector<64x128xf32> -> vector<64x128xf32>
    %20 = arith.addf %15, %19 : vector<64x128xf32>
    %c0_16 = arith.constant 0 : index
    %c0_17 = arith.constant 0 : index
    %21 = vector.load %arg5[%c0_16, %c0_17] : memref<64x1xf32, #tpu.memory_space<vmem>>, vector<64x1xf32>
    %22 = vector.broadcast %21 : vector<64x1xf32> to vector<64x128xf32>
    %23 = arith.addf %20, %22 : vector<64x128xf32>
    %c0_18 = arith.constant 0 : index
    %c0_19 = arith.constant 0 : index
    %24 = vector.load %arg6[%c0_18, %c0_19] : memref<64x128xf32, #tpu.memory_space<vmem>>, vector<64x128xf32>
    tpu.vector_store %arg6[%c0_18, %c0_19], %23 {strides = array<i32>} : memref<64x128xf32, #tpu.memory_space<vmem>>, vector<64x128xf32>,
    return
  }
  func.func @transform_0(%arg0: i32, %arg1: i32) -> (i32, i32) {
    %c0_i32 = arith.constant 0 : i32
    return %arg0, %arg1 : i32, i32
  }
  func.func @transform_1(%arg0: i32, %arg1: i32) -> (i32, i32) {
    %c0_i32 = arith.constant 0 : i32
    %c0_i32_0 = arith.constant 0 : i32
    %c0_i32_1 = arith.constant 0 : i32
    return %c0_i32, %c0_i32_0 : i32, i32
  }
  func.func @transform_2(%arg0: i32, %arg1: i32) -> (i32, i32, i32) {
    %c0_i32 = arith.constant 0 : i32
    %c0_i32_0 = arith.constant 0 : i32
    %c0_i32_1 = arith.constant 0 : i32
    %c0_i32_2 = arith.constant 0 : i32
    return %c0_i32, %c0_i32_0, %c0_i32_1 : i32, i32, i32
  }
  func.func @transform_3(%arg0: i32, %arg1: i32) -> (i32, i32) {
    %c0_i32 = arith.constant 0 : i32
    %c0_i32_0 = arith.constant 0 : i32
    %c0_i32_1 = arith.constant 0 : i32
    return %c0_i32, %c0_i32_0 : i32, i32
  }
  func.func @transform_4(%arg0: i32, %arg1: i32) -> (i32, i32) {
    %c0_i32 = arith.constant 0 : i32
    return %arg0, %arg1 : i32, i32
  }
}

</mosaic_0001>

<bundles_post_ra>
// kernel: tpu_custom_call.1
= control target key start
LH: loop header
LB: loop body
LE: loop exit
PB: predicated region body
PF: predicated region fallthrough
CT: control target
= control target key end

     0   :  { %9 = vsyncpa [#allocation3], 0  ;;  %s2157_s0 = inlined_call_operand.vmem [shape: f32[64,128], index: 0, kind: input, shape index: {}]   ;;  %s2158_s1 = inlined_call_operand.vmem [shape: f32[128,384], index: 1, kind: input, shape index: {}]   ;;  %s2159_s2 = inlined_call_operand.vmem [shape: f32[4,64,32], index: 2, kind: input, shape index: {}]   ;;  %s2160_s3 = inlined_call_operand.vmem [shape: f32[64,1], index: 3, kind: input, shape index: {}]   ;;  %s2161_s4 = inlined_call_operand.hbm [shape: f32[128,128], index: 4, kind: output, shape index: {}]  }
   0x1   :  { %11 = vsyncpa [#allocation3 + $0x1], 0  ;;  %s1719_s15 = smov 0   ;;  %s1721_s16 = smov 0  }
   0x2   :  { %s1723_s17 = smov 0   ;;  %s1725_s18 = smov 0  }
   0x3   :  { %s1727_s19 = smov 0   ;;  %s1729_s20 = smov 0  }
   0x4 LB: > { %s1172_s21 = sadd.s32 4294967295, %s1687_s20   ;;  %s1173_s22 = sadd.s32 4294967294, %s1687_s20   ;;  %s1687_s20 = sphi %s1729_s20, %s17_s20   ;;  %s1683_s19 = sphi %s1727_s19, %s2168_s19   ;;  %s1679_s18 = sphi %s1725_s18, %s2167_s18   ;;  %s1675_s17 = sphi %s1723_s17, %s2166_s17   ;;  %s1671_s16 = sphi %s1721_s16, %s2165_s16   ;;  %s1667_s15 = sphi %s1719_s15, %s2164_s15  }
   0x5   : > { %s29_s23 = sadd.s32 1, %s1683_s19  ;;  %s129_s24 = sadd.s32 1, %s1675_s17 }
   0x6   : > { %p31_p0 = scmp.ge.s32.totalorder %s29_s23, 2  ;;  %p139_p1 = scmp.ne.s32.totalorder %s1675_s17, %s1671_s16 }
   0x7   : > { %p140_p2 = scmp.eq.s32.totalorder %s1172_s21, 1  ;;  %p145_p3 = scmp.ne.s32.totalorder %s1671_s16, %s1667_s15 }
   0x8   : > { %s2170_s23 = smov (%p31_p0, %s29_s23), 0  ;;  %p146_p5 = scmp.eq.s32.totalorder %s1173_s22, 1 }
   0x9   : > { %p1759_p4 = por %p140_p2, %p139_p1  ;;  %s124_s26 = ssub.s32 %s1683_s19, %s2170_s23 }
   0xa   : > { %p1176_p6 = scmp.ge.s32.totalorder %s1687_s20, 1  ;;  %p127_p7 = scmp.eq.s32.totalorder %s124_s26, 0 }
   0xb   : > { %p1766_p8 = por %p146_p5, %p145_p3  ;;  %p185_p9 = scmp.lt.s32.totalorder %s1687_s20, 3 }
   0xc   : > { %s1772_s28 = scalar_select %p127_p7, %s1675_s17, %s129_s24  }
   0xd   : > { %p186_p10 = pnand %p1176_p6, %p185_p9 }
   0xe   : > { %v229_v0 = vld [vmem:[%s2158_s1 + $0x8] sm:$0xff] (!%p186_p10)  ;;  %v232_v1 = vld [vmem:[%s2158_s1 + $0x20] sm:$0xff] (!%p186_p10)  ;;  %v231_v4 = vld [vmem:[%s2158_s1 + $0x18] sm:$0xff] (!%p186_p10)  ;;  %v1689_v7 = vmov (!%p186_p10), 0.0   ;;  %s1178_s21 = sshll.u32 (!%p186_p10), %s1679_s18, 2  ;;  %vm467_vm0 = vcmask (!%p186_p10), 261120  }
   0xf   : > { %189 = sbr.rel (%p186_p10) target bundleno = 569 (0x239), region = 36  ;;  %v228_v2 = vld [vmem:[%s2158_s1] sm:$0xff] (!%p186_p10)  ;;  %v1428_v3 = vpack.c.bf16 (!%p186_p10), %v232_v1, %v229_v0  ;;  %v235_v5 = vld [vmem:[%s2158_s1 + $0x38] sm:$0xff] (!%p186_p10)  ;;  %v238_v6 = vld [vmem:[%s2158_s1 + $0x50] sm:$0xff] (!%p186_p10)  ;;  %340 = vmatprep.mubr.f32.mxu0 (!%p186_p10), %v1689_v7  ;;  %p215_p11 = scmp.lt.s32.totalorder (!%p186_p10), %s1178_s21, 7 }
  0x10   : > { %v1430_v8 = vpack.c.bf16 (!%p186_p10), %v231_v4, %v228_v2  ;;  %v1432_v9 = vpack.c.bf16 (!%p186_p10), %v238_v6, %v235_v5  ;;  %v234_v10 = vld [vmem:[%s2158_s1 + $0x30] sm:$0xff] (!%p186_p10)  ;;  %v237_v11 = vld [vmem:[%s2158_s1 + $0x48] sm:$0xff] (!%p186_p10)  ;;  %v244_v13 = vld [vmem:[%s2158_s1 + $0x80] sm:$0xff] (!%p186_p10)  ;;  %s211_s9 = sand.u32 (!%p186_p10), 1, %s1671_s16   ;;  %s1241_s13 = sshll.u32 (!%p186_p10), %s1679_s18, 10 }
  0x11   : > { %v241_v12 = vld [vmem:[%s2158_s1 + $0x68] sm:$0xff] (!%p186_p10)  ;;  %1429 = vmatprep.subr.bf16.mxu0 (!%p186_p10), %v1428_v3  ;;  %v1434_v14 = vpack.c.bf16 (!%p186_p10), %v237_v11, %v234_v10  ;;  %v240_v16 = vld [vmem:[%s2158_s1 + $0x60] sm:$0xff] (!%p186_p10)  ;;  %v243_v17 = vld [vmem:[%s2158_s1 + $0x78] sm:$0xff] (!%p186_p10)  ;;  %s1177_s10 = sshll.u32 (!%p186_p10), %s211_s9, 6  ;;  %s2105_s24 = scalar_lea.hbm (!%p186_p10), %s2161_s4, %s1241_s13 }
  0x12   : > { %1431 = vmatpush1.bf16.msra.mxu0 (!%p186_p10), %v1430_v8  ;;  %v1436_v15 = vpack.c.bf16 (!%p186_p10), %v244_v13, %v241_v12  ;;  %v247_v18 = vld [vmem:[%s2158_s1 + $0x98] sm:$0xff] (!%p186_p10)  ;;  %v250_v19 = vld [vmem:[%s2158_s1 + $0xb0] sm:$0xff] (!%p186_p10)  ;;  %v1438_v20 = vpack.c.bf16 (!%p186_p10), %v243_v17, %v240_v16  ;;  %v249_v23 = vld [vmem:[%s2158_s1 + $0xa8] sm:$0xff] (!%p186_p10)  ;;  %v1690_v16 = vmov (!%p186_p10), 0   ;;  %s213_s11 = scalar_lea.vmem (!%p186_p10), [#allocation2], %s1177_s10  ;;  %s2111_s18 = scalar_lea.sflag (!%p186_p10), [#allocation3], %s211_s9 }
  0x13   : > { %1433 = vmatprep.subr.bf16.mxu0 (!%p186_p10), %v1432_v9  ;;  %v1440_v21 = vpack.c.bf16 (!%p186_p10), %v250_v19, %v247_v18  ;;  %v246_v22 = vld [vmem:[%s2158_s1 + $0x90] sm:$0xff] (!%p186_p10)  ;;  %v253_v24 = vld [vmem:[%s2158_s1 + $0xc8] sm:$0xff] (!%p186_p10)  ;;  %v256_v25 = vld [vmem:[%s2158_s1 + $0xe0] sm:$0xff] (!%p186_p10)  ;;  %1608 = vset.pattern.permute.xlu1 (!%p186_p10), %v1690_v16  ;;  %s1097_s14 = sshll.u32 (!%p186_p10), %s213_s11, 4  ;;  %s1691_s26 = smov (!%p186_p10), [#allocation2]   ;;  %s2107_s14 = int_to_ptr.vmem [resolvable:$true] %s1097_s14 }
  0x14   : > { %v1442_v26 = vpack.c.bf16 (!%p186_p10), %v249_v23, %v246_v22  ;;  %v1444_v27 = vpack.c.bf16 (!%p186_p10), %v256_v25, %v253_v24  ;;  %v252_v28 = vld [vmem:[%s2158_s1 + $0xc0] sm:$0xff] (!%p186_p10)  ;;  %v255_v29 = vld [vmem:[%s2158_s1 + $0xd8] sm:$0xff] (!%p186_p10)  ;;  %v262_v31 = vld [vmem:[%s2158_s1 + $0x110] sm:$0xff] (!%p186_p10)  ;;  %1607 = vset.pattern.permute.xlu0 (!%p186_p10), %v1690_v16  ;;  %s1613_s29 = sshll.u32 (!%p186_p10), %s1691_s26, 4  ;;  %s1614_s29 = int_to_ptr.vmem [resolvable:$false] %s1613_s29 }
  0x15   : > { %v259_v30 = vld [vmem:[%s2158_s1 + $0xf8] sm:$0xff] (!%p186_p10)  ;;  %v1446_v32 = vpack.c.bf16 (!%p186_p10), %v255_v29, %v252_v28  ;;  %v258_v34 = vld [vmem:[%s2158_s1 + $0xf0] sm:$0xff] (!%p186_p10)  ;;  %v261_v35 = vld [vmem:[%s2158_s1 + $0x108] sm:$0xff] (!%p186_p10)  ;;  %s1615_s30 = scalar_lea.vmem (!%p186_p10), %s1614_s29, 2048  ;;  %p1616_p1 = scmp.lt.s32.totalorder (!%p186_p10), %s2107_s14, %s1614_s29 }
  0x16   : > { %1435 = vmatpush1.bf16.msra.mxu0 %v1434_v14  ;;  %v1448_v33 = vpack.c.bf16 %v262_v31, %v259_v30  ;;  %v265_v36 = vld [vmem:[%s2158_s1 + $0x128] sm:$0xff]  ;;  %v268_v37 = vld [vmem:[%s2158_s1 + $0x140] sm:$0xff]  ;;  %v1450_v38 = vpack.c.bf16 %v261_v35, %v258_v34  ;;  %v267_v41 = vld [vmem:[%s2158_s1 + $0x138] sm:$0xff]  ;;  %s2172_s21 = smov (!%p215_p11, %s1178_s21), 7 }
  0x17   : > { %1437 = vmatprep.subr.bf16.mxu0 %v1436_v15  ;;  %v1452_v39 = vpack.c.bf16 %v268_v37, %v265_v36  ;;  %v264_v40 = vld [vmem:[%s2158_s1 + $0x120] sm:$0xff]  ;;  %v271_v42 = vld [vmem:[%s2158_s1 + $0x158] sm:$0xff]  ;;  %v274_v43 = vld [vmem:[%s2158_s1 + $0x170] sm:$0xff]  ;;  %s1179_s5 = sshll.u32 %s2172_s21, 3 }
  0x18   : > { %v1454_v44 = vpack.c.bf16 %v267_v41, %v264_v40  ;;  %v1456_v45 = vpack.c.bf16 %v274_v43, %v271_v42  ;;  %v270_v46 = vld [vmem:[%s2158_s1 + $0x150] sm:$0xff]  ;;  %v273_v47 = vld [vmem:[%s2158_s1 + $0x168] sm:$0xff]  ;;  %s221_s12 = scalar_lea.vmem %s2157_s0, %s1179_s5  ;;  %v236_v52 = vld [vmem:[%s2158_s1 + $0x40] sm:$0xff] }
  0x19   : > { %v230_v48 = vld [vmem:[%s2158_s1 + $0x10] sm:$0xff]  ;;  %v233_v49 = vld [vmem:[%s2158_s1 + $0x28] sm:$0xff]  ;;  %v1458_v50 = vpack.c.bf16 %v273_v47, %v270_v46  ;;  %v239_v53 = vld [vmem:[%s2158_s1 + $0x58] sm:$0xff] }
  0x1a   : > { %1439 = vmatpush1.bf16.msra.mxu0 %v1438_v20  ;;  %v1460_v51 = vpack.c.bf16 %v233_v49, %v230_v48  ;;  %v1887_v54 = vld [vmem:[%s221_s12] sm:$0xff]  ;;  %v1464_v55 = vpack.c.bf16 %v239_v53, %v236_v52  ;;  %v242_v56 = vld [vmem:[%s2158_s1 + $0x70] sm:$0xff]  ;;  %v245_v57 = vld [vmem:[%s2158_s1 + $0x88] sm:$0xff] }
  0x1b   : > { %1441 = vmatprep.subr.bf16.mxu0 %v1440_v21  ;;  %v1897_v58 = vld [vmem:[%s221_s12 + $0x8] sm:$0xff]  ;;  %v1468_v59 = vpack.c.bf16 %v245_v57, %v242_v56  ;;  %v248_v60 = vld [vmem:[%s2158_s1 + $0xa0] sm:$0xff]  ;;  %v251_v61 = vld [vmem:[%s2158_s1 + $0xb8] sm:$0xff] }
  0x1c   : > { %v1907_v62 = vld [vmem:[%s221_s12 + $0x10] sm:$0xff]  ;;  %v1472_v63 = vpack.c.bf16 %v251_v61, %v248_v60  ;;  %v257_v1 = vld [vmem:[%s2158_s1 + $0xe8] sm:$0xff]  ;;  %v1917_v2 = vld [vmem:[%s221_s12 + $0x18] sm:$0xff]  ;;  %v1500_v34 = vpack.c.bf16 %v1897_v58, %v1887_v54  ;;  %s1609_s12 = scalar_lea.vmem %s2107_s14, 1024 }
  0x1d   : > { %v254_v0 = vld [vmem:[%s2158_s1 + $0xd0] sm:$0xff]  ;;  %v260_v4 = vld [vmem:[%s2158_s1 + $0x100] sm:$0xff]  ;;  %v263_v5 = vld [vmem:[%s2158_s1 + $0x118] sm:$0xff]  ;;  %p1610_p12 = scmp.ne.s32.totalorder %s2107_s14, %s1609_s12  ;;  %p1617_p2 = scmp.lt.s32.totalorder %s1615_s30, %s1609_s12 }
  0x1e   : > { %1443 = vmatpush1.bf16.msra.mxu0 %v1442_v26  ;;  %v1476_v3 = vpack.c.bf16 %v257_v1, %v254_v0  ;;  %v1480_v6 = vpack.c.bf16 %v263_v5, %v260_v4  ;;  %v269_v8 = vld [vmem:[%s2158_s1 + $0x148] sm:$0xff]  ;;  %v272_v10 = vld [vmem:[%s2158_s1 + $0x160] sm:$0xff]  ;;  %v275_v11 = vld [vmem:[%s2158_s1 + $0x178] sm:$0xff] }
  0x1f   : > { %1445 = vmatprep.subr.bf16.mxu0 %v1444_v27  ;;  %v1488_v12 = vpack.c.bf16 %v275_v11, %v272_v10  ;;  %v459_v13 = vld [vmem:[%s2159_s2] sm:$0xff]  ;;  %v1020_v14 = vld [vmem:[%s2160_s3 + $0x10] sm:$0xff]  ;;  %v1021_v17 = vld [vmem:[%s2160_s3 + $0x18] sm:$0xff]  ;;  %p1611_p13 = pnand %p1610_p12, %p1759_p4  ;;  %p1618_p3 = por %p1617_p2, %p1616_p1 }
  0x20   : > { %1356 = vmatprep.mubr.msk.f32.mxu1 %vm467_vm0, %v459_v13  ;;  %v1018_v15 = vld [vmem:[%s2160_s3] sm:$0xff]  ;;  %1038 = vperm.xlu1 %1608, %v1020_v14   ;;  %v1019_v18 = vld [vmem:[%s2160_s3 + $0x8] sm:$0xff]  ;;  %v1025_v21 = vld [vmem:[%s2160_s3 + $0x38] sm:$0xff] }
  0x21   : > { %1028 = vperm.xlu0 %1607, %v1018_v15   ;;  %v1023_v19 = vld [vmem:[%s2160_s3 + $0x28] sm:$0xff]  ;;  %v1022_v20 = vld [vmem:[%s2160_s3 + $0x20] sm:$0xff]  ;;  %v1024_v22 = vld [vmem:[%s2160_s3 + $0x30] sm:$0xff]  ;;  %p1612_p0 = pneg %p1611_p13 }
  0x22   : > { %1447 = vmatpush1.bf16.msra.mxu0 %v1446_v32  ;;  %v460_v36 = vld [vmem:[%s2159_s2 + $0x8] sm:$0xff]  ;;  %v461_v37 = vld [vmem:[%s2159_s2 + $0x10] sm:$0xff]  ;;  %v463_v40 = vld [vmem:[%s2159_s2 + $0x20] sm:$0xff] }
  0x23   : > { %1449 = vmatprep.subr.bf16.mxu0 %v1448_v33  ;;  %v464_v41 = vld [vmem:[%s2159_s2 + $0x28] sm:$0xff]  ;;  %v465_v42 = vld [vmem:[%s2159_s2 + $0x30] sm:$0xff]  ;;  %v466_v43 = vld [vmem:[%s2159_s2 + $0x38] sm:$0xff]  ;;  %p1619_p5 = pnand %p1618_p3, %p1612_p0 }
  0x24   : > { %1043 = vperm.xlu1 %1608, %v1021_v17   ;;  %v1182_v47 = vld [vmem:[%s2159_s2 + $0xd0] sm:$0xff]  ;;  %v1184_v52 = vld [vmem:[%s2159_s2 + $0xe0] sm:$0xff]  ;;  %v1187_v57 = vld [vmem:[%s2159_s2 + $0xf8] sm:$0xff] }
  0x25   : > { %1033 = vperm.xlu0 %1607, %v1019_v18   ;;  %v1186_v56 = vld [vmem:[%s2159_s2 + $0xf0] sm:$0xff]  ;;  %v1207_v61 = vld [vmem:[%s2159_s2 + $0x58] sm:$0xff] }
  0x26   : > { %1451 = vmatpush1.bf16.msra.mxu0 %v1450_v38  ;;  %v1504_v38 = vpack.c.bf16 %v1917_v2, %v1907_v62  ;;  %v1206_v60 = vld [vmem:[%s2159_s2 + $0x50] sm:$0xff]  ;;  %v1211_v1 = vld [vmem:[%s2159_s2 + $0x78] sm:$0xff] }
  0x27   : > { %1453 = vmatprep.subr.bf16.mxu0 %v1452_v39  ;;  %v462_v39 = vld [vmem:[%s2159_s2 + $0x18] sm:$0xff]  ;;  %v1210_v0 = vld [vmem:[%s2159_s2 + $0x70] sm:$0xff] }
  0x28   : > { %1053 = vperm.xlu1 %1608, %v1023_v19   ;;  %v1222_v4 = vld [vmem:[%s2159_s2 + $0x90] sm:$0xff]  ;;  %v1223_v5 = vld [vmem:[%s2159_s2 + $0x98] sm:$0xff] }
  0x29   : > { %1048 = vperm.xlu0 %1607, %v1022_v20  }
  0x2a   : > { %1455 = vmatpush1.bf16.msra.mxu0 %v1454_v44  ;;  %v1180_v44 = vld [vmem:[%s2159_s2 + $0xc0] sm:$0xff] }
  0x2b   : > { %1457 = vmatprep.subr.bf16.mxu0 %v1456_v45  ;;  %v1181_v45 = vld [vmem:[%s2159_s2 + $0xc8] sm:$0xff] }
  0x2c   : > { %1063 = vperm.xlu1 %1608, %v1025_v21  }
  0x2d   : > { %1058 = vperm.xlu0 %1607, %v1024_v22  }
  0x2e   : > { %1459 = vmatpush1.bf16.msra.mxu0 %v1458_v50  ;;  %v1183_v50 = vld [vmem:[%s2159_s2 + $0xd8] sm:$0xff] }
  0x2f   : > { %1461 = vmatprep.subr.bf16.mxu0 %v1460_v51 }
  0x31   : > { %341 = vmatmul.mubr.f32.vlgmr.msra.gmra.mrb[0].mxu0 %v1887_v54 }
  0x32   : > { %346 = vmatprep.mubr.f32.mxu0 %v1689_v7  ;;  %1463 = vmatpush3.bf16.msra.mxu0 %v1460_v51 }
  0x33   : > { %1465 = vmatprep.subr.bf16.mxu0 %v1464_v55 }
  0x35   : > { %347 = vmatmul.mubr.f32.gmra.mrb[2].mxu0 %v1897_v58 }
  0x36   : > { %352 = vmatprep.mubr.f32.mxu0 %v1689_v7  ;;  %1467 = vmatpush3.bf16.msra.mxu0 %v1464_v55  ;;  %v1185_v55 = vld [vmem:[%s2159_s2 + $0xe8] sm:$0xff] }
  0x37   : > { %1469 = vmatprep.subr.bf16.mxu0 %v1468_v59 }
  0x39   : > { %353 = vmatmul.mubr.f32.gmra.mrb[4].mxu0 %v1907_v62 }
  0x3a   : > { %358 = vmatprep.mubr.f32.mxu0 %v1689_v7  ;;  %1471 = vmatpush3.bf16.msra.mxu0 %v1468_v59  ;;  %v266_v7 = vld [vmem:[%s2158_s1 + $0x130] sm:$0xff]  ;;  %v1205_v59 = vld [vmem:[%s2159_s2 + $0x48] sm:$0xff] }
  0x3b   : > { %1473 = vmatprep.subr.bf16.mxu0 %v1472_v63  ;;  %v1484_v9 = vpack.c.bf16 %v269_v8, %v266_v7  ;;  %v1225_v7 = vld [vmem:[%s2159_s2 + $0xa8] sm:$0xff]  ;;  %v1226_v8 = vld [vmem:[%s2159_s2 + $0xb0] sm:$0xff] }
  0x3d   : > { %359 = vmatmul.mubr.f32.gmra.mrb[6].mxu0 %v1917_v2 }
  0x3e   : > { %1475 = vmatpush3.bf16.msra.mxu0 %v1472_v63  ;;  %1342 = vmatprep.mubr.f32.mxu0 %v1887_v54  ;;  %v1209_v63 = vld [vmem:[%s2159_s2 + $0x68] sm:$0xff] }
  0x3f   : > { %1477 = vmatprep.subr.bf16.mxu0 %v1476_v3 }
  0x42   : > { %1479 = vmatpush3.bf16.msra.mxu0 %v1476_v3  ;;  %v1221_v3 = vld [vmem:[%s2159_s2 + $0x88] sm:$0xff] }
  0x43   : > { %1481 = vmatprep.subr.bf16.mxu0 %v1480_v6 }
  0x46   : > { %1483 = vmatpush3.bf16.msra.mxu0 %v1480_v6  ;;  %v1224_v6 = vld [vmem:[%s2159_s2 + $0xa0] sm:$0xff] }
  0x47   : > { %1485 = vmatprep.subr.bf16.mxu0 %v1484_v9 }
  0x4a   : > { %1487 = vmatpush3.bf16.msra.mxu0 %v1484_v9  ;;  %v1227_v9 = vld [vmem:[%s2159_s2 + $0xb8] sm:$0xff] }
  0x4b   : > { %1489 = vmatprep.subr.bf16.mxu0 %v1488_v12 }
  0x4e   : > { %1491 = vmatpush3.bf16.msra.mxu0 %v1488_v12 }
  0x51   : > { %1343 = vmatmul.mubr.f32.vlgmr.msra.gmra.mrb[8].mxu0 %v1897_v58  ;;  %v1204_v58 = vld [vmem:[%s2159_s2 + $0x40] sm:$0xff] }
  0x52   : > { %1345 = vmatprep.mubr.f32.mxu0 %v1907_v62  ;;  %v1208_v62 = vld [vmem:[%s2159_s2 + $0x60] sm:$0xff] }
  0x55   : > { %1346 = vmatmul.mubr.f32.gmra.mrb[10].mxu0 %v1917_v2  ;;  %v1220_v2 = vld [vmem:[%s2159_s2 + $0x80] sm:$0xff] }
  0x9f   : > { %v1039_v10 = vpop.permute.xlu1 %1038 }
  0xa0   : > { %v1029_v11 = vpop.permute.xlu0 %1028 }
  0xa3   : > { %v1044_v12 = vpop.permute.xlu1 %1043 }
  0xa4   : > { %v1034_v13 = vpop.permute.xlu0 %1033 }
  0xa7   : > { %v1054_v21 = vpop.permute.xlu1 %1053 }
 0x104   : > { %v342_v23 = vpop.f32.mrb[0].mxu0 }
 0x105   : > { %v344_v24 = vpop.f32.mrb[1].mxu0 }
 0x108   : > { %v348_v25 = vpop.f32.mrb[2].mxu0 }
 0x109   : > { %v1492_v26 = vpack.c.bf16 %v348_v25, %v342_v23  ;;  %v350_v27 = vpop.f32.mrb[3].mxu0  ;;  %v1049_v23 = vpop.permute.xlu0 %1048 }
 0x10a   : > { %v1508_v28 = vpack.c.bf16 %v350_v27, %v344_v24 }
 0x10b   : > { %1493 = vmatprep.subr.bf16.mxu1 %v1492_v26 }
 0x10c   : > { %v354_v29 = vpop.f32.mrb[4].mxu0  ;;  %1495 = vmatpush3.bf16.msra.mxu1 %v1492_v26 }
 0x10d   : > { %v356_v30 = vpop.f32.mrb[5].mxu0 }
 0x110   : > { %v360_v31 = vpop.f32.mrb[6].mxu0 }
 0x111   : > { %v1496_v32 = vpack.c.bf16 %v360_v31, %v354_v29  ;;  %v362_v33 = vpop.f32.mrb[7].mxu0 }
 0x112   : > { %v1512_v35 = vpack.c.bf16 %v362_v33, %v356_v30  ;;  %v1059_v30 = vpop.permute.xlu0 %1058 }
 0x113   : > { %1497 = vmatprep.subr.bf16.mxu1 %v1496_v32 }
 0x114   : > { %1499 = vmatpush3.bf16.msra.mxu1 %v1496_v32 }
 0x115   : > { %1501 = vmatprep.subr.bf16.mxu1 %v1500_v34 }
 0x117   : > { %1357 = vmatmul.mubr.msk.f32.vlgmr.msra.gmra.mrb[0].mxu1 %vm467_vm0, %v460_v36 }
 0x118   : > { %1503 = vmatpush3.bf16.msra.mxu1 %v1500_v34  ;;  %1359 = vmatprep.mubr.msk.f32.mxu1 %vm467_vm0, %v461_v37 }
 0x119   : > { %1505 = vmatprep.subr.bf16.mxu1 %v1504_v38 }
 0x11b   : > { %1360 = vmatmul.mubr.msk.f32.gmra.mrb[2].mxu1 %vm467_vm0, %v462_v39 }
 0x11c   : > { %1507 = vmatpush3.bf16.msra.mxu1 %v1504_v38  ;;  %1362 = vmatprep.mubr.msk.f32.mxu1 %vm467_vm0, %v463_v40 }
 0x11d   : > { %1509 = vmatprep.subr.bf16.mxu1 %v1508_v28 }
 0x11f   : > { %1363 = vmatmul.mubr.msk.f32.gmra.mrb[4].mxu1 %vm467_vm0, %v464_v41 }
 0x120   : > { %1365 = vmatprep.mubr.msk.f32.mxu1 %vm467_vm0, %v465_v42 }
 0x123   : > { %1366 = vmatmul.mubr.msk.f32.gmra.mrb[6].mxu1 %vm467_vm0, %v466_v43 }
 0x124   : > { %1376 = vmatprep.mubr.msk.f32.mxu1 %vm467_vm0, %v1180_v44  ;;  %v1344_v46 = vpop.f32.mrb[8].mxu0 }
 0x125   : > { %v431_v48 = vpop.f32.mrb[9].mxu0 }
 0x126   : > { %v1516_v49 = vpack.c.bf16 %v1344_v46, %v431_v48 }
 0x127   : > { %1377 = vmatmul.mubr.msk.f32.vlgmr.msra.gmra.mrb[0].mxu1 %vm467_vm0, %v1181_v45 }
 0x128   : > { %1511 = vmatpush3.bf16.msra.mxu1 %v1508_v28  ;;  %1379 = vmatprep.mubr.msk.f32.mxu1 %vm467_vm0, %v1182_v47  ;;  %v1347_v51 = vpop.f32.mrb[10].mxu0  ;;  %v1064_v28 = vpop.permute.xlu1 %1063 }
 0x129   : > { %1513 = vmatprep.subr.bf16.mxu1 %v1512_v35  ;;  %v441_v53 = vpop.f32.mrb[11].mxu0 }
 0x12a   : > { %v1520_v54 = vpack.c.bf16 %v1347_v51, %v441_v53 }
 0x12b   : > { %1380 = vmatmul.mubr.msk.f32.gmra.mrb[2].mxu1 %vm467_vm0, %v1183_v50 }
 0x12c   : > { %1515 = vmatpush3.bf16.msra.mxu1 %v1512_v35  ;;  %1382 = vmatprep.mubr.msk.f32.mxu1 %vm467_vm0, %v1184_v52 }
 0x12d   : > { %1517 = vmatprep.subr.bf16.mxu1 %v1516_v49 }
 0x12f   : > { %1383 = vmatmul.mubr.msk.f32.gmra.mrb[4].mxu1 %vm467_vm0, %v1185_v55 }
 0x130   : > { %1385 = vmatprep.mubr.msk.f32.mxu1 %vm467_vm0, %v1186_v56 }
 0x133   : > { %1386 = vmatmul.mubr.msk.f32.gmra.mrb[6].mxu1 %vm467_vm0, %v1187_v57 }
 0x134   : > { %1396 = vmatprep.mubr.msk.f32.mxu1 %vm467_vm0, %v1204_v58 }
 0x137   : > { %1397 = vmatmul.mubr.msk.f32.vlgmr.msra.gmra.mrb[0].mxu1 %vm467_vm0, %v1205_v59 }
 0x138   : > { %1519 = vmatpush3.bf16.msra.mxu1 %v1516_v49  ;;  %1399 = vmatprep.mubr.msk.f32.mxu1 %vm467_vm0, %v1206_v60 }
 0x139   : > { %1521 = vmatprep.subr.bf16.mxu1 %v1520_v54 }
 0x13b   : > { %1400 = vmatmul.mubr.msk.f32.gmra.mrb[2].mxu1 %vm467_vm0, %v1207_v61 }
 0x13c   : > { %1402 = vmatprep.mubr.msk.f32.mxu1 %vm467_vm0, %v1208_v62  ;;  %1523 = vmatpush3.bf16.msra.mxu1 %v1520_v54 }
 0x13f   : > { %1403 = vmatmul.mubr.msk.f32.gmra.mrb[4].mxu1 %vm467_vm0, %v1209_v63 }
 0x140   : > { %1405 = vmatprep.mubr.msk.f32.mxu1 %vm467_vm0, %v1210_v0 }
 0x143   : > { %1406 = vmatmul.mubr.msk.f32.gmra.mrb[6].mxu1 %vm467_vm0, %v1211_v1 }
 0x144   : > { %1416 = vmatprep.mubr.msk.f32.mxu1 %vm467_vm0, %v1220_v2 }
 0x147   : > { %1417 = vmatmul.mubr.msk.f32.vlgmr.msra.gmra.mrb[0].mxu1 %vm467_vm0, %v1221_v3 }
 0x148   : > { %1419 = vmatprep.mubr.msk.f32.mxu1 %vm467_vm0, %v1222_v4 }
 0x14b   : > { %1420 = vmatmul.mubr.msk.f32.gmra.mrb[2].mxu1 %vm467_vm0, %v1223_v5 }
 0x14c   : > { %1422 = vmatprep.mubr.msk.f32.mxu1 %vm467_vm0, %v1224_v6 }
 0x14f   : > { %1423 = vmatmul.mubr.msk.f32.gmra.mrb[4].mxu1 %vm467_vm0, %v1225_v7 }
 0x150   : > { %1425 = vmatprep.mubr.msk.f32.mxu1 %vm467_vm0, %v1226_v8 }
 0x153   : > { %1426 = vmatmul.mubr.msk.f32.gmra.mrb[6].mxu1 %vm467_vm0, %v1227_v9 }
 0x21a   : > { %v1418_v14 = vpop.f32.mrb[0].mxu1 }
 0x21b   : > { %v1067_v15 = vadd.f32 %v1418_v14, %v1034_v13  ;;  %v971_v16 = vpop.f32.mrb[1].mxu1 }
 0x21c   : > { %v1066_v17 = vadd.f32 %v1029_v11, %v971_v16 }
 0x21d   : > { %1075 = vst [vmem:[%s213_s11 + $0x8] sm:$0xff] %v1067_v15 }
 0x21e   : > { %1074 = vst [vmem:[%s213_s11] sm:$0xff] %v1066_v17  ;;  %v1421_v18 = vpop.f32.mrb[2].mxu1 }
 0x21f   : > { %v1069_v19 = vadd.f32 %v1421_v18, %v1044_v12  ;;  %v981_v20 = vpop.f32.mrb[3].mxu1 }
 0x220   : > { %v1068_v22 = vadd.f32 %v1039_v10, %v981_v20 }
 0x221   : > { %1077 = vst [vmem:[%s213_s11 + $0x18] sm:$0xff] %v1069_v19 }
 0x222   : > { %1076 = vst [vmem:[%s213_s11 + $0x10] sm:$0xff] %v1068_v22  ;;  %v1424_v24 = vpop.f32.mrb[4].mxu1 }
 0x223   : > { %v1071_v25 = vadd.f32 %v1424_v24, %v1054_v21  ;;  %v991_v26 = vpop.f32.mrb[5].mxu1 }
 0x224   : > { %v1070_v27 = vadd.f32 %v1049_v23, %v991_v26 }
 0x225   : > { %1079 = vst [vmem:[%s213_s11 + $0x28] sm:$0xff] %v1071_v25 }
 0x226   : > { %1078 = vst [vmem:[%s213_s11 + $0x20] sm:$0xff] %v1070_v27  ;;  %v1427_v29 = vpop.f32.mrb[6].mxu1 }
 0x227   : > { %v1073_v31 = vadd.f32 %v1427_v29, %v1064_v28  ;;  %v1001_v32 = vpop.f32.mrb[7].mxu1 }
 0x228   : > { %v1072_v33 = vadd.f32 %v1059_v30, %v1001_v32 }
 0x229   : > { %1081 = vst [vmem:[%s213_s11 + $0x38] sm:$0xff] %v1073_v31 }
 0x22a   : > { %1080 = vst [vmem:[%s213_s11 + $0x30] sm:$0xff] %v1072_v33 }
 0x22b   : > { %1622 = shalt.err (!%p1619_p5)
}
 0x22c   : > { %s1623_s5 = scalar_lea.hbm %s2105_s24, 1024  ;;  %s1627_s8 = scalar_lea.hbm %s2161_s4, 2048 }
 0x22d   : > { %p1624_p6 = scmp.ne.s32.totalorder %s2105_s24, %s1623_s5  ;;  %p1628_p10 = scmp.lt.u32.totalorder %s2105_s24, %s2161_s4 }
 0x22e   : > { %p1629_p11 = scmp.lt.u32.totalorder %s1627_s8, %s1623_s5  ;;  %p1631_p13 = scmp.lt.u32.totalorder %s1623_s5, %s2105_s24 }
 0x22f   : > { %p1625_p7 = pnand %p1624_p6, %p1759_p4 }
 0x230   : > { %p1630_p12 = por %p1629_p11, %p1628_p10 }
 0x231   : > { %p1626_p9 = pneg %p1625_p7 }
 0x232   : > { %p1632_p0 = por %p1631_p13, %p1630_p12 }
 0x234   : > { %p1633_p1 = pnand %p1632_p0, %p1626_p9 }
 0x236   : > { %1636 = shalt.err (!%p1633_p1)
}
 0x237   : > { %s1692_s11 = smov 128   ;;  %s1693_s13 = smov 8  }
 0x238   : > { %1548 = dma.vmem_to_hbm [thread:$0]  (%p1759_p4), %s2107_s14, 1024, %s2105_s24, %s2111_s18, %s1692_s11, %s1692_s11, %s1693_s13  }
 0x239 PF: > { %p1554_p2 = scmp.ge.s32.totalorder %s1687_s20, 2  ;;  %s1112_s21 = sand.u32 1, %s1667_s15  }
 0x23a   : > { %s1113_s22 = scalar_lea.sflag [#allocation3], %s1112_s21 }
 0x23b   : > { %p1551_p3 = pnand %p1554_p2, %p1766_p8 }
 0x23d   : > { %1662 = dma.done.wait (!%p1551_p3), %s1113_s22, 1024  }
 0x23e   : > { %1664 = vsyncadd (!%p1551_p3), %s1113_s22, 4294966272  ;;  %s17_s20 = sadd.s32 1, %s1687_s20   ;;  %s2164_s15 = smov %s1671_s16 }
 0x23f   : > { %p14_p5 = scmp.ge.s32.totalorder %s17_s20, 4   ;;  %s2165_s16 = smov %s1675_s17 }
 0x240   : > { %s2166_s17 = smov %s1772_s28  ;;  %s2167_s18 = smov %s1683_s19 }
 0x241   : > { %s2168_s19 = smov %s2170_s23  ;;  %16 = sbr.rel (!%p14_p5) target bundleno = 4 (0x4), region = 74 }
 0x248   :  { %1118 = vsyncpa [#allocation3], 1 }
 0x249   :  { %1120 = vsyncpa [#allocation3 + $0x1], 1 }

// kernel: tpu_custom_call.1
= control target key start
LH: loop header
LB: loop body
LE: loop exit
PB: predicated region body
PF: predicated region fallthrough
CT: control target
= control target key end

     0   :  { %9 = vsyncpa [#allocation3], 0  ;;  %s2157_s0 = inlined_call_operand.vmem [shape: f32[64,128], index: 0, kind: input, shape index: {}]   ;;  %s2158_s1 = inlined_call_operand.vmem [shape: f32[128,384], index: 1, kind: input, shape index: {}]   ;;  %s2159_s2 = inlined_call_operand.vmem [shape: f32[4,64,32], index: 2, kind: input, shape index: {}]   ;;  %s2160_s3 = inlined_call_operand.vmem [shape: f32[64,1], index: 3, kind: input, shape index: {}]   ;;  %s2161_s4 = inlined_call_operand.hbm [shape: f32[128,128], index: 4, kind: output, shape index: {}]  }
   0x1   :  { %11 = vsyncpa [#allocation3 + $0x1], 0  ;;  %s1719_s15 = smov 0   ;;  %s1721_s16 = smov 0  }
   0x2   :  { %s1723_s17 = smov 0   ;;  %s1725_s18 = smov 0  }
   0x3   :  { %s1727_s19 = smov 0   ;;  %s1729_s20 = smov 0  }
   0x4 LB: > { %s1172_s21 = sadd.s32 4294967295, %s1687_s20   ;;  %s1173_s22 = sadd.s32 4294967294, %s1687_s20   ;;  %s1687_s20 = sphi %s1729_s20, %s17_s20   ;;  %s1683_s19 = sphi %s1727_s19, %s2168_s19   ;;  %s1679_s18 = sphi %s1725_s18, %s2167_s18   ;;  %s1675_s17 = sphi %s1723_s17, %s2166_s17   ;;  %s1671_s16 = sphi %s1721_s16, %s2165_s16   ;;  %s1667_s15 = sphi %s1719_s15, %s2164_s15  }
   0x5   : > { %s29_s23 = sadd.s32 1, %s1683_s19  ;;  %s129_s24 = sadd.s32 1, %s1675_s17 }
   0x6   : > { %p31_p0 = scmp.ge.s32.totalorder %s29_s23, 2  ;;  %p139_p1 = scmp.ne.s32.totalorder %s1675_s17, %s1671_s16 }
   0x7   : > { %p140_p2 = scmp.eq.s32.totalorder %s1172_s21, 1  ;;  %p145_p3 = scmp.ne.s32.totalorder %s1671_s16, %s1667_s15 }
   0x8   : > { %s2170_s23 = smov (%p31_p0, %s29_s23), 0  ;;  %p146_p5 = scmp.eq.s32.totalorder %s1173_s22, 1 }
   0x9   : > { %p1759_p4 = por %p140_p2, %p139_p1  ;;  %s124_s26 = ssub.s32 %s1683_s19, %s2170_s23 }
   0xa   : > { %p1176_p6 = scmp.ge.s32.totalorder %s1687_s20, 1  ;;  %p127_p7 = scmp.eq.s32.totalorder %s124_s26, 0 }
   0xb   : > { %p1766_p8 = por %p146_p5, %p145_p3  ;;  %p185_p9 = scmp.lt.s32.totalorder %s1687_s20, 3 }
   0xc   : > { %s1772_s28 = scalar_select %p127_p7, %s1675_s17, %s129_s24  }
   0xd   : > { %p186_p10 = pnand %p1176_p6, %p185_p9 }
   0xe   : > { %v229_v0 = vld [vmem:[%s2158_s1 + $0x8] sm:$0xff] (!%p186_p10)  ;;  %v232_v1 = vld [vmem:[%s2158_s1 + $0x20] sm:$0xff] (!%p186_p10)  ;;  %v231_v4 = vld [vmem:[%s2158_s1 + $0x18] sm:$0xff] (!%p186_p10)  ;;  %v1689_v7 = vmov (!%p186_p10), 0.0   ;;  %s1178_s21 = sshll.u32 (!%p186_p10), %s1679_s18, 2  ;;  %vm467_vm0 = vcmask (!%p186_p10), 261120  }
   0xf   : > { %189 = sbr.rel (%p186_p10) target bundleno = 569 (0x239), region = 36  ;;  %v228_v2 = vld [vmem:[%s2158_s1] sm:$0xff] (!%p186_p10)  ;;  %v1428_v3 = vpack.c.bf16 (!%p186_p10), %v232_v1, %v229_v0  ;;  %v235_v5 = vld [vmem:[%s2158_s1 + $0x38] sm:$0xff] (!%p186_p10)  ;;  %v238_v6 = vld [vmem:[%s2158_s1 + $0x50] sm:$0xff] (!%p186_p10)  ;;  %340 = vmatprep.mubr.f32.mxu0 (!%p186_p10), %v1689_v7  ;;  %p215_p11 = scmp.lt.s32.totalorder (!%p186_p10), %s1178_s21, 7 }
  0x10   : > { %v1430_v8 = vpack.c.bf16 (!%p186_p10), %v231_v4, %v228_v2  ;;  %v1432_v9 = vpack.c.bf16 (!%p186_p10), %v238_v6, %v235_v5  ;;  %v234_v10 = vld [vmem:[%s2158_s1 + $0x30] sm:$0xff] (!%p186_p10)  ;;  %v237_v11 = vld [vmem:[%s2158_s1 + $0x48] sm:$0xff] (!%p186_p10)  ;;  %v244_v13 = vld [vmem:[%s2158_s1 + $0x80] sm:$0xff] (!%p186_p10)  ;;  %s211_s9 = sand.u32 (!%p186_p10), 1, %s1671_s16   ;;  %s1241_s13 = sshll.u32 (!%p186_p10), %s1679_s18, 10 }
  0x11   : > { %v241_v12 = vld [vmem:[%s2158_s1 + $0x68] sm:$0xff] (!%p186_p10)  ;;  %1429 = vmatprep.subr.bf16.mxu0 (!%p186_p10), %v1428_v3  ;;  %v1434_v14 = vpack.c.bf16 (!%p186_p10), %v237_v11, %v234_v10  ;;  %v240_v16 = vld [vmem:[%s2158_s1 + $0x60] sm:$0xff] (!%p186_p10)  ;;  %v243_v17 = vld [vmem:[%s2158_s1 + $0x78] sm:$0xff] (!%p186_p10)  ;;  %s1177_s10 = sshll.u32 (!%p186_p10), %s211_s9, 6  ;;  %s2105_s24 = scalar_lea.hbm (!%p186_p10), %s2161_s4, %s1241_s13 }
  0x12   : > { %1431 = vmatpush1.bf16.msra.mxu0 (!%p186_p10), %v1430_v8  ;;  %v1436_v15 = vpack.c.bf16 (!%p186_p10), %v244_v13, %v241_v12  ;;  %v247_v18 = vld [vmem:[%s2158_s1 + $0x98] sm:$0xff] (!%p186_p10)  ;;  %v250_v19 = vld [vmem:[%s2158_s1 + $0xb0] sm:$0xff] (!%p186_p10)  ;;  %v1438_v20 = vpack.c.bf16 (!%p186_p10), %v243_v17, %v240_v16  ;;  %v249_v23 = vld [vmem:[%s2158_s1 + $0xa8] sm:$0xff] (!%p186_p10)  ;;  %v1690_v16 = vmov (!%p186_p10), 0   ;;  %s213_s11 = scalar_lea.vmem (!%p186_p10), [#allocation2], %s1177_s10  ;;  %s2111_s18 = scalar_lea.sflag (!%p186_p10), [#allocation3], %s211_s9 }
  0x13   : > { %1433 = vmatprep.subr.bf16.mxu0 (!%p186_p10), %v1432_v9  ;;  %v1440_v21 = vpack.c.bf16 (!%p186_p10), %v250_v19, %v247_v18  ;;  %v246_v22 = vld [vmem:[%s2158_s1 + $0x90] sm:$0xff] (!%p186_p10)  ;;  %v253_v24 = vld [vmem:[%s2158_s1 + $0xc8] sm:$0xff] (!%p186_p10)  ;;  %v256_v25 = vld [vmem:[%s2158_s1 + $0xe0] sm:$0xff] (!%p186_p10)  ;;  %1608 = vset.pattern.permute.xlu1 (!%p186_p10), %v1690_v16  ;;  %s1097_s14 = sshll.u32 (!%p186_p10), %s213_s11, 4  ;;  %s1691_s26 = smov (!%p186_p10), [#allocation2]   ;;  %s2107_s14 = int_to_ptr.vmem [resolvable:$true] %s1097_s14 }
  0x14   : > { %v1442_v26 = vpack.c.bf16 (!%p186_p10), %v249_v23, %v246_v22  ;;  %v1444_v27 = vpack.c.bf16 (!%p186_p10), %v256_v25, %v253_v24  ;;  %v252_v28 = vld [vmem:[%s2158_s1 + $0xc0] sm:$0xff] (!%p186_p10)  ;;  %v255_v29 = vld [vmem:[%s2158_s1 + $0xd8] sm:$0xff] (!%p186_p10)  ;;  %v262_v31 = vld [vmem:[%s2158_s1 + $0x110] sm:$0xff] (!%p186_p10)  ;;  %1607 = vset.pattern.permute.xlu0 (!%p186_p10), %v1690_v16  ;;  %s1613_s29 = sshll.u32 (!%p186_p10), %s1691_s26, 4  ;;  %s1614_s29 = int_to_ptr.vmem [resolvable:$false] %s1613_s29 }
  0x15   : > { %v259_v30 = vld [vmem:[%s2158_s1 + $0xf8] sm:$0xff] (!%p186_p10)  ;;  %v1446_v32 = vpack.c.bf16 (!%p186_p10), %v255_v29, %v252_v28  ;;  %v258_v34 = vld [vmem:[%s2158_s1 + $0xf0] sm:$0xff] (!%p186_p10)  ;;  %v261_v35 = vld [vmem:[%s2158_s1 + $0x108] sm:$0xff] (!%p186_p10)  ;;  %s1615_s30 = scalar_lea.vmem (!%p186_p10), %s1614_s29, 2048  ;;  %p1616_p1 = scmp.lt.s32.totalorder (!%p186_p10), %s2107_s14, %s1614_s29 }
  0x16   : > { %1435 = vmatpush1.bf16.msra.mxu0 %v1434_v14  ;;  %v1448_v33 = vpack.c.bf16 %v262_v31, %v259_v30  ;;  %v265_v36 = vld [vmem:[%s2158_s1 + $0x128] sm:$0xff]  ;;  %v268_v37 = vld [vmem:[%s2158_s1 + $0x140] sm:$0xff]  ;;  %v1450_v38 = vpack.c.bf16 %v261_v35, %v258_v34  ;;  %v267_v41 = vld [vmem:[%s2158_s1 + $0x138] sm:$0xff]  ;;  %s2172_s21 = smov (!%p215_p11, %s1178_s21), 7 }
  0x17   : > { %1437 = vmatprep.subr.bf16.mxu0 %v1436_v15  ;;  %v1452_v39 = vpack.c.bf16 %v268_v37, %v265_v36  ;;  %v264_v40 = vld [vmem:[%s2158_s1 + $0x120] sm:$0xff]  ;;  %v271_v42 = vld [vmem:[%s2158_s1 + $0x158] sm:$0xff]  ;;  %v274_v43 = vld [vmem:[%s2158_s1 + $0x170] sm:$0xff]  ;;  %s1179_s5 = sshll.u32 %s2172_s21, 3 }
  0x18   : > { %v1454_v44 = vpack.c.bf16 %v267_v41, %v264_v40  ;;  %v1456_v45 = vpack.c.bf16 %v274_v43, %v271_v42  ;;  %v270_v46 = vld [vmem:[%s2158_s1 + $0x150] sm:$0xff]  ;;  %v273_v47 = vld [vmem:[%s2158_s1 + $0x168] sm:$0xff]  ;;  %s221_s12 = scalar_lea.vmem %s2157_s0, %s1179_s5  ;;  %v236_v52 = vld [vmem:[%s2158_s1 + $0x40] sm:$0xff] }
  0x19   : > { %v230_v48 = vld [vmem:[%s2158_s1 + $0x10] sm:$0xff]  ;;  %v233_v49 = vld [vmem:[%s2158_s1 + $0x28] sm:$0xff]  ;;  %v1458_v50 = vpack.c.bf16 %v273_v47, %v270_v46  ;;  %v239_v53 = vld [vmem:[%s2158_s1 + $0x58] sm:$0xff] }
  0x1a   : > { %1439 = vmatpush1.bf16.msra.mxu0 %v1438_v20  ;;  %v1460_v51 = vpack.c.bf16 %v233_v49, %v230_v48  ;;  %v1887_v54 = vld [vmem:[%s221_s12] sm:$0xff]  ;;  %v1464_v55 = vpack.c.bf16 %v239_v53, %v236_v52  ;;  %v242_v56 = vld [vmem:[%s2158_s1 + $0x70] sm:$0xff]  ;;  %v245_v57 = vld [vmem:[%s2158_s1 + $0x88] sm:$0xff] }
  0x1b   : > { %1441 = vmatprep.subr.bf16.mxu0 %v1440_v21  ;;  %v1897_v58 = vld [vmem:[%s221_s12 + $0x8] sm:$0xff]  ;;  %v1468_v59 = vpack.c.bf16 %v245_v57, %v242_v56  ;;  %v248_v60 = vld [vmem:[%s2158_s1 + $0xa0] sm:$0xff]  ;;  %v251_v61 = vld [vmem:[%s2158_s1 + $0xb8] sm:$0xff] }
  0x1c   : > { %v1907_v62 = vld [vmem:[%s221_s12 + $0x10] sm:$0xff]  ;;  %v1472_v63 = vpack.c.bf16 %v251_v61, %v248_v60  ;;  %v257_v1 = vld [vmem:[%s2158_s1 + $0xe8] sm:$0xff]  ;;  %v1917_v2 = vld [vmem:[%s221_s12 + $0x18] sm:$0xff]  ;;  %v1500_v34 = vpack.c.bf16 %v1897_v58, %v1887_v54  ;;  %s1609_s12 = scalar_lea.vmem %s2107_s14, 1024 }
  0x1d   : > { %v254_v0 = vld [vmem:[%s2158_s1 + $0xd0] sm:$0xff]  ;;  %v260_v4 = vld [vmem:[%s2158_s1 + $0x100] sm:$0xff]  ;;  %v263_v5 = vld [vmem:[%s2158_s1 + $0x118] sm:$0xff]  ;;  %p1610_p12 = scmp.ne.s32.totalorder %s2107_s14, %s1609_s12  ;;  %p1617_p2 = scmp.lt.s32.totalorder %s1615_s30, %s1609_s12 }
  0x1e   : > { %1443 = vmatpush1.bf16.msra.mxu0 %v1442_v26  ;;  %v1476_v3 = vpack.c.bf16 %v257_v1, %v254_v0  ;;  %v1480_v6 = vpack.c.bf16 %v263_v5, %v260_v4  ;;  %v269_v8 = vld [vmem:[%s2158_s1 + $0x148] sm:$0xff]  ;;  %v272_v10 = vld [vmem:[%s2158_s1 + $0x160] sm:$0xff]  ;;  %v275_v11 = vld [vmem:[%s2158_s1 + $0x178] sm:$0xff] }
  0x1f   : > { %1445 = vmatprep.subr.bf16.mxu0 %v1444_v27  ;;  %v1488_v12 = vpack.c.bf16 %v275_v11, %v272_v10  ;;  %v459_v13 = vld [vmem:[%s2159_s2] sm:$0xff]  ;;  %v1020_v14 = vld [vmem:[%s2160_s3 + $0x10] sm:$0xff]  ;;  %v1021_v17 = vld [vmem:[%s2160_s3 + $0x18] sm:$0xff]  ;;  %p1611_p13 = pnand %p1610_p12, %p1759_p4  ;;  %p1618_p3 = por %p1617_p2, %p1616_p1 }
  0x20   : > { %1356 = vmatprep.mubr.msk.f32.mxu1 %vm467_vm0, %v459_v13  ;;  %v1018_v15 = vld [vmem:[%s2160_s3] sm:$0xff]  ;;  %1038 = vperm.xlu1 %1608, %v1020_v14   ;;  %v1019_v18 = vld [vmem:[%s2160_s3 + $0x8] sm:$0xff]  ;;  %v1025_v21 = vld [vmem:[%s2160_s3 + $0x38] sm:$0xff] }
  0x21   : > { %1028 = vperm.xlu0 %1607, %v1018_v15   ;;  %v1023_v19 = vld [vmem:[%s2160_s3 + $0x28] sm:$0xff]  ;;  %v1022_v20 = vld [vmem:[%s2160_s3 + $0x20] sm:$0xff]  ;;  %v1024_v22 = vld [vmem:[%s2160_s3 + $0x30] sm:$0xff]  ;;  %p1612_p0 = pneg %p1611_p13 }
  0x22   : > { %1447 = vmatpush1.bf16.msra.mxu0 %v1446_v32  ;;  %v460_v36 = vld [vmem:[%s2159_s2 + $0x8] sm:$0xff]  ;;  %v461_v37 = vld [vmem:[%s2159_s2 + $0x10] sm:$0xff]  ;;  %v463_v40 = vld [vmem:[%s2159_s2 + $0x20] sm:$0xff] }
  0x23   : > { %1449 = vmatprep.subr.bf16.mxu0 %v1448_v33  ;;  %v464_v41 = vld [vmem:[%s2159_s2 + $0x28] sm:$0xff]  ;;  %v465_v42 = vld [vmem:[%s2159_s2 + $0x30] sm:$0xff]  ;;  %v466_v43 = vld [vmem:[%s2159_s2 + $0x38] sm:$0xff]  ;;  %p1619_p5 = pnand %p1618_p3, %p1612_p0 }
  0x24   : > { %1043 = vperm.xlu1 %1608, %v1021_v17   ;;  %v1182_v47 = vld [vmem:[%s2159_s2 + $0xd0] sm:$0xff]  ;;  %v1184_v52 = vld [vmem:[%s2159_s2 + $0xe0] sm:$0xff]  ;;  %v1187_v57 = vld [vmem:[%s2159_s2 + $0xf8] sm:$0xff] }
  0x25   : > { %1033 = vperm.xlu0 %1607, %v1019_v18   ;;  %v1186_v56 = vld [vmem:[%s2159_s2 + $0xf0] sm:$0xff]  ;;  %v1207_v61 = vld [vmem:[%s2159_s2 + $0x58] sm:$0xff] }
  0x26   : > { %1451 = vmatpush1.bf16.msra.mxu0 %v1450_v38  ;;  %v1504_v38 = vpack.c.bf16 %v1917_v2, %v1907_v62  ;;  %v1206_v60 = vld [vmem:[%s2159_s2 + $0x50] sm:$0xff]  ;;  %v1211_v1 = vld [vmem:[%s2159_s2 + $0x78] sm:$0xff] }
  0x27   : > { %1453 = vmatprep.subr.bf16.mxu0 %v1452_v39  ;;  %v462_v39 = vld [vmem:[%s2159_s2 + $0x18] sm:$0xff]  ;;  %v1210_v0 = vld [vmem:[%s2159_s2 + $0x70] sm:$0xff] }
  0x28   : > { %1053 = vperm.xlu1 %1608, %v1023_v19   ;;  %v1222_v4 = vld [vmem:[%s2159_s2 + $0x90] sm:$0xff]  ;;  %v1223_v5 = vld [vmem:[%s2159_s2 + $0x98] sm:$0xff] }
  0x29   : > { %1048 = vperm.xlu0 %1607, %v1022_v20  }
  0x2a   : > { %1455 = vmatpush1.bf16.msra.mxu0 %v1454_v44  ;;  %v1180_v44 = vld [vmem:[%s2159_s2 + $0xc0] sm:$0xff] }
  0x2b   : > { %1457 = vmatprep.subr.bf16.mxu0 %v1456_v45  ;;  %v1181_v45 = vld [vmem:[%s2159_s2 + $0xc8] sm:$0xff] }
  0x2c   : > { %1063 = vperm.xlu1 %1608, %v1025_v21  }
  0x2d   : > { %1058 = vperm.xlu0 %1607, %v1024_v22  }
  0x2e   : > { %1459 = vmatpush1.bf16.msra.mxu0 %v1458_v50  ;;  %v1183_v50 = vld [vmem:[%s2159_s2 + $0xd8] sm:$0xff] }
  0x2f   : > { %1461 = vmatprep.subr.bf16.mxu0 %v1460_v51 }
  0x31   : > { %341 = vmatmul.mubr.f32.vlgmr.msra.gmra.mrb[0].mxu0 %v1887_v54 }
  0x32   : > { %346 = vmatprep.mubr.f32.mxu0 %v1689_v7  ;;  %1463 = vmatpush3.bf16.msra.mxu0 %v1460_v51 }
  0x33   : > { %1465 = vmatprep.subr.bf16.mxu0 %v1464_v55 }
  0x35   : > { %347 = vmatmul.mubr.f32.gmra.mrb[2].mxu0 %v1897_v58 }
  0x36   : > { %352 = vmatprep.mubr.f32.mxu0 %v1689_v7  ;;  %1467 = vmatpush3.bf16.msra.mxu0 %v1464_v55  ;;  %v1185_v55 = vld [vmem:[%s2159_s2 + $0xe8] sm:$0xff] }
  0x37   : > { %1469 = vmatprep.subr.bf16.mxu0 %v1468_v59 }
  0x39   : > { %353 = vmatmul.mubr.f32.gmra.mrb[4].mxu0 %v1907_v62 }
  0x3a   : > { %358 = vmatprep.mubr.f32.mxu0 %v1689_v7  ;;  %1471 = vmatpush3.bf16.msra.mxu0 %v1468_v59  ;;  %v266_v7 = vld [vmem:[%s2158_s1 + $0x130] sm:$0xff]  ;;  %v1205_v59 = vld [vmem:[%s2159_s2 + $0x48] sm:$0xff] }
  0x3b   : > { %1473 = vmatprep.subr.bf16.mxu0 %v1472_v63  ;;  %v1484_v9 = vpack.c.bf16 %v269_v8, %v266_v7  ;;  %v1225_v7 = vld [vmem:[%s2159_s2 + $0xa8] sm:$0xff]  ;;  %v1226_v8 = vld [vmem:[%s2159_s2 + $0xb0] sm:$0xff] }
  0x3d   : > { %359 = vmatmul.mubr.f32.gmra.mrb[6].mxu0 %v1917_v2 }
  0x3e   : > { %1475 = vmatpush3.bf16.msra.mxu0 %v1472_v63  ;;  %1342 = vmatprep.mubr.f32.mxu0 %v1887_v54  ;;  %v1209_v63 = vld [vmem:[%s2159_s2 + $0x68] sm:$0xff] }
  0x3f   : > { %1477 = vmatprep.subr.bf16.mxu0 %v1476_v3 }
  0x42   : > { %1479 = vmatpush3.bf16.msra.mxu0 %v1476_v3  ;;  %v1221_v3 = vld [vmem:[%s2159_s2 + $0x88] sm:$0xff] }
  0x43   : > { %1481 = vmatprep.subr.bf16.mxu0 %v1480_v6 }
  0x46   : > { %1483 = vmatpush3.bf16.msra.mxu0 %v1480_v6  ;;  %v1224_v6 = vld [vmem:[%s2159_s2 + $0xa0] sm:$0xff] }
  0x47   : > { %1485 = vmatprep.subr.bf16.mxu0 %v1484_v9 }
  0x4a   : > { %1487 = vmatpush3.bf16.msra.mxu0 %v1484_v9  ;;  %v1227_v9 = vld [vmem:[%s2159_s2 + $0xb8] sm:$0xff] }
  0x4b   : > { %1489 = vmatprep.subr.bf16.mxu0 %v1488_v12 }
  0x4e   : > { %1491 = vmatpush3.bf16.msra.mxu0 %v1488_v12 }
  0x51   : > { %1343 = vmatmul.mubr.f32.vlgmr.msra.gmra.mrb[8].mxu0 %v1897_v58  ;;  %v1204_v58 = vld [vmem:[%s2159_s2 + $0x40] sm:$0xff] }
  0x52   : > { %1345 = vmatprep.mubr.f32.mxu0 %v1907_v62  ;;  %v1208_v62 = vld [vmem:[%s2159_s2 + $0x60] sm:$0xff] }
  0x55   : > { %1346 = vmatmul.mubr.f32.gmra.mrb[10].mxu0 %v1917_v2  ;;  %v1220_v2 = vld [vmem:[%s2159_s2 + $0x80] sm:$0xff] }
  0x9f   : > { %v1039_v10 = vpop.permute.xlu1 %1038 }
  0xa0   : > { %v1029_v11 = vpop.permute.xlu0 %1028 }
  0xa3   : > { %v1044_v12 = vpop.permute.xlu1 %1043 }
  0xa4   : > { %v1034_v13 = vpop.permute.xlu0 %1033 }
  0xa7   : > { %v1054_v21 = vpop.permute.xlu1 %1053 }
 0x104   : > { %v342_v23 = vpop.f32.mrb[0].mxu0 }
 0x105   : > { %v344_v24 = vpop.f32.mrb[1].mxu0 }
 0x108   : > { %v348_v25 = vpop.f32.mrb[2].mxu0 }
 0x109   : > { %v1492_v26 = vpack.c.bf16 %v348_v25, %v342_v23  ;;  %v350_v27 = vpop.f32.mrb[3].mxu0  ;;  %v1049_v23 = vpop.permute.xlu0 %1048 }
 0x10a   : > { %v1508_v28 = vpack.c.bf16 %v350_v27, %v344_v24 }
 0x10b   : > { %1493 = vmatprep.subr.bf16.mxu1 %v1492_v26 }
 0x10c   : > { %v354_v29 = vpop.f32.mrb[4].mxu0  ;;  %1495 = vmatpush3.bf16.msra.mxu1 %v1492_v26 }
 0x10d   : > { %v356_v30 = vpop.f32.mrb[5].mxu0 }
 0x110   : > { %v360_v31 = vpop.f32.mrb[6].mxu0 }
 0x111   : > { %v1496_v32 = vpack.c.bf16 %v360_v31, %v354_v29  ;;  %v362_v33 = vpop.f32.mrb[7].mxu0 }
 0x112   : > { %v1512_v35 = vpack.c.bf16 %v362_v33, %v356_v30  ;;  %v1059_v30 = vpop.permute.xlu0 %1058 }
 0x113   : > { %1497 = vmatprep.subr.bf16.mxu1 %v1496_v32 }
 0x114   : > { %1499 = vmatpush3.bf16.msra.mxu1 %v1496_v32 }
 0x115   : > { %1501 = vmatprep.subr.bf16.mxu1 %v1500_v34 }
 0x117   : > { %1357 = vmatmul.mubr.msk.f32.vlgmr.msra.gmra.mrb[0].mxu1 %vm467_vm0, %v460_v36 }
 0x118   : > { %1503 = vmatpush3.bf16.msra.mxu1 %v1500_v34  ;;  %1359 = vmatprep.mubr.msk.f32.mxu1 %vm467_vm0, %v461_v37 }
 0x119   : > { %1505 = vmatprep.subr.bf16.mxu1 %v1504_v38 }
 0x11b   : > { %1360 = vmatmul.mubr.msk.f32.gmra.mrb[2].mxu1 %vm467_vm0, %v462_v39 }
 0x11c   : > { %1507 = vmatpush3.bf16.msra.mxu1 %v1504_v38  ;;  %1362 = vmatprep.mubr.msk.f32.mxu1 %vm467_vm0, %v463_v40 }
 0x11d   : > { %1509 = vmatprep.subr.bf16.mxu1 %v1508_v28 }
 0x11f   : > { %1363 = vmatmul.mubr.msk.f32.gmra.mrb[4].mxu1 %vm467_vm0, %v464_v41 }
 0x120   : > { %1365 = vmatprep.mubr.msk.f32.mxu1 %vm467_vm0, %v465_v42 }
 0x123   : > { %1366 = vmatmul.mubr.msk.f32.gmra.mrb[6].mxu1 %vm467_vm0, %v466_v43 }
 0x124   : > { %1376 = vmatprep.mubr.msk.f32.mxu1 %vm467_vm0, %v1180_v44  ;;  %v1344_v46 = vpop.f32.mrb[8].mxu0 }
 0x125   : > { %v431_v48 = vpop.f32.mrb[9].mxu0 }
 0x126   : > { %v1516_v49 = vpack.c.bf16 %v1344_v46, %v431_v48 }
 0x127   : > { %1377 = vmatmul.mubr.msk.f32.vlgmr.msra.gmra.mrb[0].mxu1 %vm467_vm0, %v1181_v45 }
 0x128   : > { %1511 = vmatpush3.bf16.msra.mxu1 %v1508_v28  ;;  %1379 = vmatprep.mubr.msk.f32.mxu1 %vm467_vm0, %v1182_v47  ;;  %v1347_v51 = vpop.f32.mrb[10].mxu0  ;;  %v1064_v28 = vpop.permute.xlu1 %1063 }
 0x129   : > { %1513 = vmatprep.subr.bf16.mxu1 %v1512_v35  ;;  %v441_v53 = vpop.f32.mrb[11].mxu0 }
 0x12a   : > { %v1520_v54 = vpack.c.bf16 %v1347_v51, %v441_v53 }
 0x12b   : > { %1380 = vmatmul.mubr.msk.f32.gmra.mrb[2].mxu1 %vm467_vm0, %v1183_v50 }
 0x12c   : > { %1515 = vmatpush3.bf16.msra.mxu1 %v1512_v35  ;;  %1382 = vmatprep.mubr.msk.f32.mxu1 %vm467_vm0, %v1184_v52 }
 0x12d   : > { %1517 = vmatprep.subr.bf16.mxu1 %v1516_v49 }
 0x12f   : > { %1383 = vmatmul.mubr.msk.f32.gmra.mrb[4].mxu1 %vm467_vm0, %v1185_v55 }
 0x130   : > { %1385 = vmatprep.mubr.msk.f32.mxu1 %vm467_vm0, %v1186_v56 }
 0x133   : > { %1386 = vmatmul.mubr.msk.f32.gmra.mrb[6].mxu1 %vm467_vm0, %v1187_v57 }
 0x134   : > { %1396 = vmatprep.mubr.msk.f32.mxu1 %vm467_vm0, %v1204_v58 }
 0x137   : > { %1397 = vmatmul.mubr.msk.f32.vlgmr.msra.gmra.mrb[0].mxu1 %vm467_vm0, %v1205_v59 }
 0x138   : > { %1519 = vmatpush3.bf16.msra.mxu1 %v1516_v49  ;;  %1399 = vmatprep.mubr.msk.f32.mxu1 %vm467_vm0, %v1206_v60 }
 0x139   : > { %1521 = vmatprep.subr.bf16.mxu1 %v1520_v54 }
 0x13b   : > { %1400 = vmatmul.mubr.msk.f32.gmra.mrb[2].mxu1 %vm467_vm0, %v1207_v61 }
 0x13c   : > { %1402 = vmatprep.mubr.msk.f32.mxu1 %vm467_vm0, %v1208_v62  ;;  %1523 = vmatpush3.bf16.msra.mxu1 %v1520_v54 }
 0x13f   : > { %1403 = vmatmul.mubr.msk.f32.gmra.mrb[4].mxu1 %vm467_vm0, %v1209_v63 }
 0x140   : > { %1405 = vmatprep.mubr.msk.f32.mxu1 %vm467_vm0, %v1210_v0 }
 0x143   : > { %1406 = vmatmul.mubr.msk.f32.gmra.mrb[6].mxu1 %vm467_vm0, %v1211_v1 }
 0x144   : > { %1416 = vmatprep.mubr.msk.f32.mxu1 %vm467_vm0, %v1220_v2 }
 0x147   : > { %1417 = vmatmul.mubr.msk.f32.vlgmr.msra.gmra.mrb[0].mxu1 %vm467_vm0, %v1221_v3 }
 0x148   : > { %1419 = vmatprep.mubr.msk.f32.mxu1 %vm467_vm0, %v1222_v4 }
 0x14b   : > { %1420 = vmatmul.mubr.msk.f32.gmra.mrb[2].mxu1 %vm467_vm0, %v1223_v5 }
 0x14c   : > { %1422 = vmatprep.mubr.msk.f32.mxu1 %vm467_vm0, %v1224_v6 }
 0x14f   : > { %1423 = vmatmul.mubr.msk.f32.gmra.mrb[4].mxu1 %vm467_vm0, %v1225_v7 }
 0x150   : > { %1425 = vmatprep.mubr.msk.f32.mxu1 %vm467_vm0, %v1226_v8 }
 0x153   : > { %1426 = vmatmul.mubr.msk.f32.gmra.mrb[6].mxu1 %vm467_vm0, %v1227_v9 }
 0x21a   : > { %v1418_v14 = vpop.f32.mrb[0].mxu1 }
 0x21b   : > { %v1067_v15 = vadd.f32 %v1418_v14, %v1034_v13  ;;  %v971_v16 = vpop.f32.mrb[1].mxu1 }
 0x21c   : > { %v1066_v17 = vadd.f32 %v1029_v11, %v971_v16 }
 0x21d   : > { %1075 = vst [vmem:[%s213_s11 + $0x8] sm:$0xff] %v1067_v15 }
 0x21e   : > { %1074 = vst [vmem:[%s213_s11] sm:$0xff] %v1066_v17  ;;  %v1421_v18 = vpop.f32.mrb[2].mxu1 }
 0x21f   : > { %v1069_v19 = vadd.f32 %v1421_v18, %v1044_v12  ;;  %v981_v20 = vpop.f32.mrb[3].mxu1 }
 0x220   : > { %v1068_v22 = vadd.f32 %v1039_v10, %v981_v20 }
 0x221   : > { %1077 = vst [vmem:[%s213_s11 + $0x18] sm:$0xff] %v1069_v19 }
 0x222   : > { %1076 = vst [vmem:[%s213_s11 + $0x10] sm:$0xff] %v1068_v22  ;;  %v1424_v24 = vpop.f32.mrb[4].mxu1 }
 0x223   : > { %v1071_v25 = vadd.f32 %v1424_v24, %v1054_v21  ;;  %v991_v26 = vpop.f32.mrb[5].mxu1 }
 0x224   : > { %v1070_v27 = vadd.f32 %v1049_v23, %v991_v26 }
 0x225   : > { %1079 = vst [vmem:[%s213_s11 + $0x28] sm:$0xff] %v1071_v25 }
 0x226   : > { %1078 = vst [vmem:[%s213_s11 + $0x20] sm:$0xff] %v1070_v27  ;;  %v1427_v29 = vpop.f32.mrb[6].mxu1 }
 0x227   : > { %v1073_v31 = vadd.f32 %v1427_v29, %v1064_v28  ;;  %v1001_v32 = vpop.f32.mrb[7].mxu1 }
 0x228   : > { %v1072_v33 = vadd.f32 %v1059_v30, %v1001_v32 }
 0x229   : > { %1081 = vst [vmem:[%s213_s11 + $0x38] sm:$0xff] %v1073_v31 }
 0x22a   : > { %1080 = vst [vmem:[%s213_s11 + $0x30] sm:$0xff] %v1072_v33 }
 0x22b   : > { %1622 = shalt.err (!%p1619_p5)
}
 0x22c   : > { %s1623_s5 = scalar_lea.hbm %s2105_s24, 1024  ;;  %s1627_s8 = scalar_lea.hbm %s2161_s4, 2048 }
 0x22d   : > { %p1624_p6 = scmp.ne.s32.totalorder %s2105_s24, %s1623_s5  ;;  %p1628_p10 = scmp.lt.u32.totalorder %s2105_s24, %s2161_s4 }
 0x22e   : > { %p1629_p11 = scmp.lt.u32.totalorder %s1627_s8, %s1623_s5  ;;  %p1631_p13 = scmp.lt.u32.totalorder %s1623_s5, %s2105_s24 }
 0x22f   : > { %p1625_p7 = pnand %p1624_p6, %p1759_p4 }
 0x230   : > { %p1630_p12 = por %p1629_p11, %p1628_p10 }
 0x231   : > { %p1626_p9 = pneg %p1625_p7 }
 0x232   : > { %p1632_p0 = por %p1631_p13, %p1630_p12 }
 0x234   : > { %p1633_p1 = pnand %p1632_p0, %p1626_p9 }
 0x236   : > { %1636 = shalt.err (!%p1633_p1)
}
 0x237   : > { %s1692_s11 = smov 128   ;;  %s1693_s13 = smov 8  }
 0x238   : > { %1548 = dma.vmem_to_hbm [thread:$0]  (%p1759_p4), %s2107_s14, 1024, %s2105_s24, %s2111_s18, %s1692_s11, %s1692_s11, %s1693_s13  }
 0x239 PF: > { %p1554_p2 = scmp.ge.s32.totalorder %s1687_s20, 2  ;;  %s1112_s21 = sand.u32 1, %s1667_s15  }
 0x23a   : > { %s1113_s22 = scalar_lea.sflag [#allocation3], %s1112_s21 }
 0x23b   : > { %p1551_p3 = pnand %p1554_p2, %p1766_p8 }
 0x23d   : > { %1662 = dma.done.wait (!%p1551_p3), %s1113_s22, 1024  }
 0x23e   : > { %1664 = vsyncadd (!%p1551_p3), %s1113_s22, 4294966272  ;;  %s17_s20 = sadd.s32 1, %s1687_s20   ;;  %s2164_s15 = smov %s1671_s16 }
 0x23f   : > { %p14_p5 = scmp.ge.s32.totalorder %s17_s20, 4   ;;  %s2165_s16 = smov %s1675_s17 }
 0x240   : > { %s2166_s17 = smov %s1772_s28  ;;  %s2167_s18 = smov %s1683_s19 }
 0x241   : > { %s2168_s19 = smov %s2170_s23  ;;  %16 = sbr.rel (!%p14_p5) target bundleno = 4 (0x4), region = 74 }
 0x248   :  { %1118 = vsyncpa [#allocation3], 1 }
 0x249   :  { %1120 = vsyncpa [#allocation3 + $0x1], 1 }

</bundles_post_ra>
